<compile_context>
chip_gen: v6e
topology: v6e:2x2x1
jax: 0.10.0
libtpu: 0.0.40
codegen_flags: <defaults>
</compile_context>

<pallas_src>
import functools

import jax
import jax.numpy as jnp
from jax.experimental import pallas as pl
from jax.experimental.pallas import tpu as pltpu


def _round_up(x, m):
    return ((x + m - 1) // m) * m


def _tensorcores_per_device():
    """Megacore detection: v4 / v5p / v7x expose 2 TensorCores per device."""
    try:
        kind = jax.devices()[0].device_kind.lower()
    except Exception:
        return 1
    if any(m in kind for m in ("lite", "v5e", "v6e", "v6")):
        return 1
    if any(m in kind for m in ("v4", "v5p", "v7", "7x")):
        return 2
    return 1


def _plan(B, E, L, act_itemsize, w_itemsize, *, max_tile_b, n_cores):
    """Pick the batch tile and an explicit scoped-VMEM limit."""
    row_align = 16 if act_itemsize < 4 else 8        # bf16 packs 16 rows / vreg
    # Weight + bias blocks (grid-invariant, but budget 2 pipeline buffers).
    w_bytes = 2 * ((E + L) * 2 * E + 2 * E) * w_itemsize
    # VMEM budget for the double-buffered activation tiles (x_ent + x_lit + out).
    act_budget = max(4 << 20, (40 << 20) - w_bytes)
    per_row = 2 * (2 * E + L) * act_itemsize          # x2 for double-buffering
    tile_b = min(max_tile_b, max(1, act_budget // per_row), B)
    if n_cores > 1 and B >= 2 * n_cores * row_align:
        # Give each TensorCore >= 2 pipelined steps instead of exactly one.
        tile_b = min(tile_b, pl.cdiv(B, 2 * n_cores))
    tile_b = max(row_align, _round_up(tile_b, row_align))
    need = w_bytes + 2 * tile_b * (2 * E + L) * act_itemsize + (4 << 20)
    vmem_limit = int(min(max(need, 32 << 20), 64 << 20))   # <= v7x physical VMEM
    return tile_b, vmem_limit


def _gate_kernel(x_ent_ref, x_lit_ref, w_ent_ref, w_lit_ref, bias_ref, out_ref, *, E):
    # Native dtype straight into the MXU (no forced f32 upcast of operands).
    x_ent = x_ent_ref[...]
    x_lit = x_lit_ref[...]

    # Single fused projection producing [g_pre | gate_pre] in one pass:
    #   pre = x_ent @ [Wg_ent | Wg1] + x_lit @ [Wg_lit | Wg2] + [bg | gate_bias]
    pre = (jnp.dot(x_ent, w_ent_ref[...], preferred_element_type=jnp.float32)
           + jnp.dot(x_lit, w_lit_ref[...], preferred_element_type=jnp.float32)
           + bias_ref[...].astype(jnp.float32))

    g_emb = jnp.tanh(pre[:, :E])           # lane-aligned slice (E % 128 == 0) -> free
    gate = jax.nn.sigmoid(pre[:, E:])      # EUP handles tanh / sigmoid

    # Blend: x_ent + gate*(g_emb - x_ent)  == (1-gate)*x_ent + gate*g_emb
    # (3 VPU ops/elem instead of 4, one fewer live f32 temporary).
    x_ent_f = x_ent.astype(jnp.float32)
    out_ref[...] = (x_ent_f + gate * (g_emb - x_ent_f)).astype(out_ref.dtype)


def pack_params(params, dtype=None):
    """Fuse the raw module parameters for the kernel (one-time cost).

    params = (wg, bg, wg1, wg2, gate_bias) with weights stored (in, out):
      wg: (input_size, E), bg: (E,), wg1: (E, E), wg2: (L, E), gate_bias: (E,)
    Returns (w_ent_all (E, 2E), w_lit_all (L, 2E), bias_all (1, 2E)).
    """
    wg, bg, wg1, wg2, gate_bias = params
    E = wg1.shape[0]
    wg_ent, wg_lit = wg[:E, :], wg[E:, :]
    w_ent_all = jnp.concatenate([wg_ent, wg1], axis=1)              # (E, 2E)
    w_lit_all = jnp.concatenate([wg_lit, wg2], axis=1)              # (L, 2E)
    bias_all = jnp.concatenate([bg, gate_bias], axis=0)[None, :]    # (1, 2E)
    if dtype is not None:
        w_ent_all = w_ent_all.astype(dtype)
        w_lit_all = w_lit_all.astype(dtype)
        bias_all = bias_all.astype(dtype)
    return (w_ent_all, w_lit_all, bias_all)


def gate_forward(x_ent, x_lit, packed_params, *, max_tile_b=2048,
                 activation_dtype=None, out_dtype=None):
    """Pallas wrapper.  x_ent: (B, E), x_lit: (B, L).

    activation_dtype: optionally cast the streamed activations (e.g. bfloat16)
      at the wrapper boundary; the kernel is HBM-bound so this is a ~2x
      roofline win (MXU accumulation stays f32).  Pack weights in the same
      dtype for full effect.
    out_dtype: output dtype (defaults to the (possibly cast) activation dtype).
    """
    if activation_dtype is not None:
        x_ent = x_ent.astype(activation_dtype)
        x_lit = x_lit.astype(activation_dtype)
    B, E = x_ent.shape
    L = x_lit.shape[1]
    w_ent_all, w_lit_all, bias_all = packed_params
    assert w_ent_all.shape == (E, 2 * E)
    assert w_lit_all.shape == (L, 2 * E)
    assert bias_all.shape == (1, 2 * E)
    # Lane alignment: keeps the [:, :E] / [:, E:] slices of the fused result
    # and the output stores unmasked / relayout-free.
    assert E % 128 == 0 and L % 128 == 0, "E and L must be multiples of 128"

    out_dtype = out_dtype if out_dtype is not None else x_ent.dtype

    act_itemsize = jnp.dtype(x_ent.dtype).itemsize
    w_itemsize = jnp.dtype(w_ent_all.dtype).itemsize
    tile_b, vmem_limit = _plan(B, E, L, act_itemsize, w_itemsize,
                               max_tile_b=max_tile_b,
                               n_cores=_tensorcores_per_device())
    grid = (pl.cdiv(B, tile_b),)

    kernel = functools.partial(_gate_kernel, E=E)

    return pl.pallas_call(
        kernel,
        out_shape=jax.ShapeDtypeStruct((B, E), out_dtype),
        grid_spec=pltpu.PrefetchScalarGridSpec(
            num_scalar_prefetch=0,
            grid=grid,
            in_specs=[
                pl.BlockSpec((tile_b, E), lambda i: (i, 0)),      # x_ent tile
                pl.BlockSpec((tile_b, L), lambda i: (i, 0)),      # x_lit tile
                # Grid-invariant weights/bias: constant index_map keeps them
                # resident in VMEM across grid steps (no per-step re-fetch).
                pl.BlockSpec((E, 2 * E), lambda i: (0, 0)),       # [Wg_ent | Wg1]
                pl.BlockSpec((L, 2 * E), lambda i: (0, 0)),       # [Wg_lit | Wg2]
                pl.BlockSpec((1, 2 * E), lambda i: (0, 0)),       # [bg | gate_bias]
            ],
            out_specs=pl.BlockSpec((tile_b, E), lambda i: (i, 0)),
        ),
        compiler_params=pltpu.CompilerParams(
            dimension_semantics=("parallel",),
            vmem_limit_bytes=vmem_limit),
    )(x_ent, x_lit, w_ent_all, w_lit_all, bias_all)


def init_params(key, input_size, output_size, dtype=jnp.float32):
    """Deterministic synthetic init (shapes match the nn.Module __init__)."""
    E = output_size
    L = input_size - output_size
    k = jax.random.split(key, 4)
    # Stored as (in_features, out_features) == PyTorch weight.T
    wg = jax.random.normal(k[0], (input_size, E), dtype) * 0.05
    bg = jax.random.normal(k[1], (E,), dtype) * 0.05
    wg1 = jax.random.normal(k[2], (E, E), dtype) * 0.05
    wg2 = jax.random.normal(k[3], (L, E), dtype) * 0.05
    gate_bias = jnp.zeros((E,), dtype)   # nn.Parameter(torch.zeros(output_size))
    return (wg, bg, wg1, wg2, gate_bias)


def gate_reference(x_ent, x_lit, params):
    """Pure-JAX reference mirroring the PyTorch forward exactly (f32)."""
    wg, bg, wg1, wg2, gate_bias = params
    f32 = lambda a: a.astype(jnp.float32)
    x = jnp.concatenate([f32(x_ent), f32(x_lit)], axis=-1)
    g_embedded = jnp.tanh(x @ f32(wg) + f32(bg))
    gate = jax.nn.sigmoid(f32(x_ent) @ f32(wg1) + f32(x_lit) @ f32(wg2) + f32(gate_bias))
    return (1.0 - gate) * f32(x_ent) + gate * g_embedded


if __name__ == "__main__":
    # Small shapes: batch=512 (splits into 4 tiles on 2-TC chips, 1 tile on
    # single-TC chips), output_size=128 (x_ent dim), lit dim=128, input=256.
    B = 512
    output_size = 128
    lit_size = 128
    input_size = output_size + lit_size

    key = jax.random.PRNGKey(0)
    k_ent, k_lit, k_params = jax.random.split(key, 3)
    x_ent = jax.random.normal(k_ent, (B, output_size), jnp.float32)
    x_lit = jax.random.normal(k_lit, (B, lit_size), jnp.float32)

    params = init_params(k_params, input_size, output_size, jnp.float32)
    packed = pack_params(params)
    ref = gate_reference(x_ent, x_lit, params)

    # f32 path (tight check).
    out = jax.block_until_ready(gate_forward(x_ent, x_lit, packed))
    assert out.shape == (B, output_size)
    assert jnp.allclose(out, ref, atol=1e-5, rtol=1e-5), "f32 mismatch vs reference"

    # bf16 activation fast path for f32 callers: halves HBM traffic on
    # activations + output, f32 MXU accumulation (loose check; output is bf16).
    packed_bf16 = pack_params(params, dtype=jnp.bfloat16)
    out_bf16 = jax.block_until_ready(
        gate_forward(x_ent, x_lit, packed_bf16,
                     activation_dtype=jnp.bfloat16, out_dtype=jnp.bfloat16))
    assert out_bf16.shape == (B, output_size)
    assert jnp.allclose(out_bf16.astype(jnp.float32), ref, atol=6e-2, rtol=6e-2), \
        "bf16 mismatch vs reference"

    print("KERNEL_OK")
</pallas_src>

<mosaic_0001>
module attributes {stable_mosaic.version = 11 : i64} {
  func.func @_gate_kernel(%arg0: i32, %arg1: memref<512x128xf32, #tpu.memory_space<vmem>>, %arg2: memref<512x128xf32, #tpu.memory_space<vmem>>, %arg3: memref<128x256xf32, #tpu.memory_space<vmem>>, %arg4: memref<128x256xf32, #tpu.memory_space<vmem>>, %arg5: memref<1x256xf32, #tpu.memory_space<vmem>>, %arg6: memref<512x128xf32, #tpu.memory_space<vmem>>) attributes {dimension_semantics = [#tpu.dimension_semantics<parallel>], iteration_bounds = array<i64: 1>, scalar_prefetch = 0 : i64, scratch_operands = 0 : i64, tpu.core_type = #tpu.core_type<tc>, window_params = [{transform_indices = @transform_0, window_bounds = array<i64: 512, 128>}, {transform_indices = @transform_1, window_bounds = array<i64: 512, 128>}, {pipeline_mode = #tpu.pipeline_mode<synchronous>, transform_indices = @transform_2, window_bounds = array<i64: 128, 256>}, {pipeline_mode = #tpu.pipeline_mode<synchronous>, transform_indices = @transform_3, window_bounds = array<i64: 128, 256>}, {pipeline_mode = #tpu.pipeline_mode<synchronous>, transform_indices = @transform_4, window_bounds = array<i64: 1, 256>}, {transform_indices = @transform_5, window_bounds = array<i64: 512, 128>}]} {
    %c0 = arith.constant 0 : index
    %c0_0 = arith.constant 0 : index
    %0 = vector.load %arg1[%c0, %c0_0] : memref<512x128xf32, #tpu.memory_space<vmem>>, vector<512x128xf32>
    %c0_1 = arith.constant 0 : index
    %c0_2 = arith.constant 0 : index
    %1 = vector.load %arg2[%c0_1, %c0_2] : memref<512x128xf32, #tpu.memory_space<vmem>>, vector<512x128xf32>
    %c0_3 = arith.constant 0 : index
    %c0_4 = arith.constant 0 : index
    %2 = vector.load %arg3[%c0_3, %c0_4] : memref<128x256xf32, #tpu.memory_space<vmem>>, vector<128x256xf32>
    %cst = arith.constant dense<0.000000e+00> : vector<512x256xf32>
    %3 = tpu.matmul %0, %2, %cst {dimension_numbers = #tpu.dot_dimension_numbers<[1], [0], [0], [1], [0, 0, 1, 1], [], []>} : vector<512x128xf32>, vector<128x256xf32>, vector<512x256xf32> -> vector<512x256xf32>
    %c0_5 = arith.constant 0 : index
    %c0_6 = arith.constant 0 : index
    %4 = vector.load %arg4[%c0_5, %c0_6] : memref<128x256xf32, #tpu.memory_space<vmem>>, vector<128x256xf32>
    %cst_7 = arith.constant dense<0.000000e+00> : vector<512x256xf32>
    %5 = tpu.matmul %1, %4, %cst_7 {dimension_numbers = #tpu.dot_dimension_numbers<[1], [0], [0], [1], [0, 0, 1, 1], [], []>} : vector<512x128xf32>, vector<128x256xf32>, vector<512x256xf32> -> vector<512x256xf32>
    %6 = arith.addf %3, %5 : vector<512x256xf32>
    %c0_8 = arith.constant 0 : index
    %c0_9 = arith.constant 0 : index
    %7 = vector.load %arg5[%c0_8, %c0_9] : memref<1x256xf32, #tpu.memory_space<vmem>>, vector<1x256xf32>
    %8 = vector.broadcast %7 : vector<1x256xf32> to vector<512x256xf32>
    %9 = arith.addf %6, %8 : vector<512x256xf32>
    %10 = vector.extract_strided_slice %9 {offsets = [0, 0], sizes = [512, 128], strides = [1, 1]} : vector<512x256xf32> to vector<512x128xf32>
    %11 = math.tanh %10 : vector<512x128xf32>
    %12 = vector.extract_strided_slice %9 {offsets = [0, 128], sizes = [512, 128], strides = [1, 1]} : vector<512x256xf32> to vector<512x128xf32>
    %13 = arith.negf %12 : vector<512x128xf32>
    %14 = math.exp %13 : vector<512x128xf32>
    %cst_10 = arith.constant 1.000000e+00 : f32
    %15 = vector.broadcast %cst_10 : f32 to vector<512x128xf32>
    %16 = arith.addf %15, %14 : vector<512x128xf32>
    %17 = arith.divf %15, %16 : vector<512x128xf32>
    %18 = arith.subf %11, %0 : vector<512x128xf32>
    %19 = arith.mulf %17, %18 : vector<512x128xf32>
    %20 = arith.addf %0, %19 : vector<512x128xf32>
    %c0_11 = arith.constant 0 : index
    %c0_12 = arith.constant 0 : index
    %21 = vector.load %arg6[%c0_11, %c0_12] : memref<512x128xf32, #tpu.memory_space<vmem>>, vector<512x128xf32>
    tpu.vector_store %arg6[%c0_11, %c0_12], %20 {strides = array<i32>} : memref<512x128xf32, #tpu.memory_space<vmem>>, vector<512x128xf32>,
    return
  }
  func.func @transform_0(%arg0: i32) -> (i32, i32) {
    %c0_i32 = arith.constant 0 : i32
    %c0_i32_0 = arith.constant 0 : i32
    return %arg0, %c0_i32 : i32, i32
  }
  func.func @transform_1(%arg0: i32) -> (i32, i32) {
    %c0_i32 = arith.constant 0 : i32
    %c0_i32_0 = arith.constant 0 : i32
    return %arg0, %c0_i32 : i32, i32
  }
  func.func @transform_2(%arg0: i32) -> (i32, i32) {
    %c0_i32 = arith.constant 0 : i32
    %c0_i32_0 = arith.constant 0 : i32
    %c0_i32_1 = arith.constant 0 : i32
    return %c0_i32, %c0_i32_0 : i32, i32
  }
  func.func @transform_3(%arg0: i32) -> (i32, i32) {
    %c0_i32 = arith.constant 0 : i32
    %c0_i32_0 = arith.constant 0 : i32
    %c0_i32_1 = arith.constant 0 : i32
    return %c0_i32, %c0_i32_0 : i32, i32
  }
  func.func @transform_4(%arg0: i32) -> (i32, i32) {
    %c0_i32 = arith.constant 0 : i32
    %c0_i32_0 = arith.constant 0 : i32
    %c0_i32_1 = arith.constant 0 : i32
    return %c0_i32, %c0_i32_0 : i32, i32
  }
  func.func @transform_5(%arg0: i32) -> (i32, i32) {
    %c0_i32 = arith.constant 0 : i32
    %c0_i32_0 = arith.constant 0 : i32
    return %arg0, %c0_i32 : i32, i32
  }
}

</mosaic_0001>

<bundles_post_ra>
// kernel: tpu_custom_call.1
= control target key start
LH: loop header
LB: loop body
LE: loop exit
PB: predicated region body
PF: predicated region fallthrough
CT: control target
= control target key end

     0   :  { %10 = vsyncpa [#allocation3], 0  ;;  %s3149_s0 = inlined_call_operand.hbm [shape: f32[512,128], index: 0, kind: input, shape index: {}]   ;;  %s3150_s1 = inlined_call_operand.hbm [shape: f32[512,128], index: 1, kind: input, shape index: {}]   ;;  %s3151_s2 = inlined_call_operand.hbm [shape: f32[128,256], index: 2, kind: input, shape index: {}]   ;;  %s3152_s3 = inlined_call_operand.hbm [shape: f32[128,256], index: 3, kind: input, shape index: {}]   ;;  %s3153_s4 = inlined_call_operand.vmem [shape: f32[1,256], index: 4, kind: input, shape index: {}]   ;;  %s3154_s5 = inlined_call_operand.hbm [shape: f32[512,128], index: 5, kind: output, shape index: {}]  }
   0x1   :  { %11 = vsyncpa [#allocation6], 0 }
   0x2   :  { %12 = vsyncpa [#allocation9], 0 }
   0x3   :  { %13 = vsyncpa [#allocation4], 0  ;;  %s2657_s18 = smov [#allocation5]   ;;  %s2658_s20 = smov [#allocation2]  }
   0x4   :  { %s31_s19 = sshll.u32 %s2657_s18, 4  ;;  %s19_s21 = sshll.u32 %s2658_s20, 4  ;;  %s32_s19 = int_to_ptr.vmem [resolvable:$true] %s31_s19  ;;  %s20_s21 = int_to_ptr.vmem [resolvable:$true] %s19_s21 }
   0x5   :  { %s2557_s22 = scalar_lea.vmem %s32_s19, 8192  ;;  %p2562_p1 = scmp.lt.s32.totalorder %s32_s19, %s32_s19 }
   0x6   :  { %p2558_p0 = scmp.ne.s32.totalorder %s32_s19, %s2557_s22  ;;  %p2563_p2 = scmp.lt.s32.totalorder %s2557_s22, %s2557_s22 }
   0x8   :  { %p2564_p3 = por %p2563_p2, %p2562_p1 }
   0xa   :  { %p2565_p4 = pnand %p2564_p3, %p2558_p0 }
   0xc   :  { %2568 = shalt.err (!%p2565_p4)
}
   0xd   :  { %s2659_s23 = smov 128   ;;  %s2660_s24 = smov 8  }
   0xe   :  { %37 = dma.hbm_to_vmem [thread:$0]  %s3150_s1, 8192, %s32_s19, [#allocation6], %s2659_s23, %s2659_s23, %s2660_s24  }
   0xf   :  { %s2577_s27 = scalar_lea.vmem %s20_s21, 8192  ;;  %p2582_p6 = scmp.lt.s32.totalorder %s20_s21, %s20_s21 }
  0x10   :  { %p2578_p5 = scmp.ne.s32.totalorder %s20_s21, %s2577_s27  ;;  %p2583_p7 = scmp.lt.s32.totalorder %s2577_s27, %s2577_s27 }
  0x12   :  { %p2584_p8 = por %p2583_p7, %p2582_p6 }
  0x14   :  { %p2585_p9 = pnand %p2584_p8, %p2578_p5 }
  0x16   :  { %2588 = shalt.err (!%p2585_p9)
}
  0x17   :  { %25 = dma.hbm_to_vmem [thread:$0]  %s3149_s0, 8192, %s20_s21, [#allocation3], %s2659_s23, %s2659_s23, %s2660_s24  }
  0x18   :  { %s2661_s30 = smov [#allocation7]  }
  0x19   :  { %s43_s6 = sshll.u32 %s2661_s30, 4  ;;  %s44_s6 = int_to_ptr.vmem [resolvable:$true] %s43_s6 }
  0x1a   :  { %s2597_s7 = scalar_lea.vmem %s44_s6, 4096  ;;  %p2602_p11 = scmp.lt.s32.totalorder %s44_s6, %s44_s6 }
  0x1b   :  { %p2598_p10 = scmp.ne.s32.totalorder %s44_s6, %s2597_s7  ;;  %p2603_p12 = scmp.lt.s32.totalorder %s2597_s7, %s2597_s7 }
  0x1d   :  { %p2604_p13 = por %p2603_p12, %p2602_p11 }
  0x1f   :  { %p2605_p0 = pnand %p2604_p13, %p2598_p10 }
  0x21   :  { %2608 = shalt.err (!%p2605_p0)
}
  0x22   :  { %s2662_s1 = smov 256   ;;  %s2663_s8 = smov 16  }
  0x23   :  { %49 = dma.hbm_to_vmem [thread:$0]  %s3151_s2, 4096, %s44_s6, [#allocation6], %s2662_s1, %s2662_s1, %s2663_s8  }
  0x24   :  { %s2664_s11 = smov [#allocation8]  }
  0x25   :  { %s55_s12 = sshll.u32 %s2664_s11, 4  ;;  %s56_s12 = int_to_ptr.vmem [resolvable:$true] %s55_s12 }
  0x26   :  { %s2617_s0 = scalar_lea.vmem %s56_s12, 4096  ;;  %p2622_p2 = scmp.lt.s32.totalorder %s56_s12, %s56_s12 }
  0x27   :  { %p2618_p1 = scmp.ne.s32.totalorder %s56_s12, %s2617_s0  ;;  %p2623_p3 = scmp.lt.s32.totalorder %s2617_s0, %s2617_s0 }
  0x29   :  { %p2624_p4 = por %p2623_p3, %p2622_p2 }
  0x2b   :  { %p2625_p5 = pnand %p2624_p4, %p2618_p1 }
  0x2d   :  { %2628 = shalt.err (!%p2625_p5)
}
  0x2e   :  { %61 = dma.hbm_to_vmem [thread:$0]  %s3152_s3, 4096, %s56_s12, [#allocation9], %s2662_s1, %s2662_s1, %s2663_s8  }
  0x2f   :  { %2649 = dma.done.wait [#allocation3], 8192  }
  0x30   :  { %2650 = vsyncadd [#allocation3], 4294959104 }
  0x31   :  { %2651 = dma.done.wait [#allocation6], 12288  }
  0x32   :  { %2652 = vsyncadd [#allocation6], 4294955008 }
  0x33   :  { %2653 = dma.done.wait [#allocation9], 4096  }
  0x34   :  { %2654 = vsyncadd [#allocation9], 4294963200  ;;  %v2665_v0 = vmov 0.0   ;;  %v267_v1 = vld [vmem:[#allocation8 + $0xf8] sm:$0xff]  ;;  %v266_v3 = vld [vmem:[#allocation8 + $0xf0] sm:$0xff] }
  0x35   :  { %332 = vmatprep.mubr.f32.mxu0 %v2665_v0  ;;  %781 = vmatprep.mubr.f32.mxu1 %v2665_v0  ;;  %v235_v2 = vld [vmem:[#allocation7 + $0xf8] sm:$0xff]  ;;  %v234_v4 = vld [vmem:[#allocation7 + $0xf0] sm:$0xff]  ;;  %v265_v5 = vld [vmem:[#allocation8 + $0xe8] sm:$0xff] }
  0x36   :  { %268 = vmatprep.subr.mxu0 %v267_v1  ;;  %717 = vmatprep.subr.mxu1 %v235_v2  ;;  %v233_v6 = vld [vmem:[#allocation7 + $0xe8] sm:$0xff]  ;;  %v264_v7 = vld [vmem:[#allocation8 + $0xe0] sm:$0xff]  ;;  %v263_v9 = vld [vmem:[#allocation8 + $0xd8] sm:$0xff] }
  0x37   :  { %269 = vmatpush1.msra.mxu0 %v266_v3  ;;  %718 = vmatpush1.msra.mxu1 %v234_v4  ;;  %v232_v8 = vld [vmem:[#allocation7 + $0xe0] sm:$0xff]  ;;  %v231_v10 = vld [vmem:[#allocation7 + $0xd8] sm:$0xff]  ;;  %v262_v11 = vld [vmem:[#allocation8 + $0xd0] sm:$0xff] }
  0x38   :  { %270 = vmatprep.subr.mxu0 %v265_v5  ;;  %719 = vmatprep.subr.mxu1 %v233_v6  ;;  %v230_v12 = vld [vmem:[#allocation7 + $0xd0] sm:$0xff]  ;;  %v261_v13 = vld [vmem:[#allocation8 + $0xc8] sm:$0xff]  ;;  %v260_v15 = vld [vmem:[#allocation8 + $0xc0] sm:$0xff] }
  0x39   :  { %271 = vmatpush1.msra.mxu0 %v264_v7  ;;  %720 = vmatpush1.msra.mxu1 %v232_v8  ;;  %v229_v14 = vld [vmem:[#allocation7 + $0xc8] sm:$0xff]  ;;  %v228_v16 = vld [vmem:[#allocation7 + $0xc0] sm:$0xff]  ;;  %v259_v17 = vld [vmem:[#allocation8 + $0xb8] sm:$0xff] }
  0x3a   :  { %272 = vmatprep.subr.mxu0 %v263_v9  ;;  %721 = vmatprep.subr.mxu1 %v231_v10  ;;  %v227_v18 = vld [vmem:[#allocation7 + $0xb8] sm:$0xff]  ;;  %v258_v19 = vld [vmem:[#allocation8 + $0xb0] sm:$0xff]  ;;  %v257_v21 = vld [vmem:[#allocation8 + $0xa8] sm:$0xff] }
  0x3b   :  { %273 = vmatpush1.msra.mxu0 %v262_v11  ;;  %722 = vmatpush1.msra.mxu1 %v230_v12  ;;  %v226_v20 = vld [vmem:[#allocation7 + $0xb0] sm:$0xff]  ;;  %v225_v22 = vld [vmem:[#allocation7 + $0xa8] sm:$0xff]  ;;  %v256_v23 = vld [vmem:[#allocation8 + $0xa0] sm:$0xff] }
  0x3c   :  { %274 = vmatprep.subr.mxu0 %v261_v13  ;;  %723 = vmatprep.subr.mxu1 %v229_v14  ;;  %v224_v24 = vld [vmem:[#allocation7 + $0xa0] sm:$0xff]  ;;  %v255_v25 = vld [vmem:[#allocation8 + $0x98] sm:$0xff]  ;;  %v254_v27 = vld [vmem:[#allocation8 + $0x90] sm:$0xff] }
  0x3d   :  { %275 = vmatpush1.msra.mxu0 %v260_v15  ;;  %724 = vmatpush1.msra.mxu1 %v228_v16  ;;  %v223_v26 = vld [vmem:[#allocation7 + $0x98] sm:$0xff]  ;;  %v222_v28 = vld [vmem:[#allocation7 + $0x90] sm:$0xff]  ;;  %v253_v29 = vld [vmem:[#allocation8 + $0x88] sm:$0xff] }
  0x3e   :  { %276 = vmatprep.subr.mxu0 %v259_v17  ;;  %725 = vmatprep.subr.mxu1 %v227_v18  ;;  %v221_v30 = vld [vmem:[#allocation7 + $0x88] sm:$0xff]  ;;  %v252_v31 = vld [vmem:[#allocation8 + $0x80] sm:$0xff]  ;;  %v251_v33 = vld [vmem:[#allocation8 + $0x78] sm:$0xff] }
  0x3f   :  { %277 = vmatpush1.msra.mxu0 %v258_v19  ;;  %726 = vmatpush1.msra.mxu1 %v226_v20  ;;  %v220_v32 = vld [vmem:[#allocation7 + $0x80] sm:$0xff]  ;;  %v219_v34 = vld [vmem:[#allocation7 + $0x78] sm:$0xff]  ;;  %v250_v35 = vld [vmem:[#allocation8 + $0x70] sm:$0xff] }
  0x40   :  { %278 = vmatprep.subr.mxu0 %v257_v21  ;;  %727 = vmatprep.subr.mxu1 %v225_v22  ;;  %v218_v36 = vld [vmem:[#allocation7 + $0x70] sm:$0xff]  ;;  %v249_v37 = vld [vmem:[#allocation8 + $0x68] sm:$0xff]  ;;  %v248_v39 = vld [vmem:[#allocation8 + $0x60] sm:$0xff] }
  0x41   :  { %279 = vmatpush1.msra.mxu0 %v256_v23  ;;  %728 = vmatpush1.msra.mxu1 %v224_v24  ;;  %v217_v38 = vld [vmem:[#allocation7 + $0x68] sm:$0xff]  ;;  %v216_v40 = vld [vmem:[#allocation7 + $0x60] sm:$0xff]  ;;  %v247_v41 = vld [vmem:[#allocation8 + $0x58] sm:$0xff] }
  0x42   :  { %280 = vmatprep.subr.mxu0 %v255_v25  ;;  %729 = vmatprep.subr.mxu1 %v223_v26  ;;  %v215_v42 = vld [vmem:[#allocation7 + $0x58] sm:$0xff]  ;;  %v246_v43 = vld [vmem:[#allocation8 + $0x50] sm:$0xff]  ;;  %v245_v45 = vld [vmem:[#allocation8 + $0x48] sm:$0xff] }
  0x43   :  { %281 = vmatpush1.msra.mxu0 %v254_v27  ;;  %730 = vmatpush1.msra.mxu1 %v222_v28  ;;  %v214_v44 = vld [vmem:[#allocation7 + $0x50] sm:$0xff]  ;;  %v213_v46 = vld [vmem:[#allocation7 + $0x48] sm:$0xff]  ;;  %v244_v47 = vld [vmem:[#allocation8 + $0x40] sm:$0xff] }
  0x44   :  { %282 = vmatprep.subr.mxu0 %v253_v29  ;;  %731 = vmatprep.subr.mxu1 %v221_v30  ;;  %v212_v48 = vld [vmem:[#allocation7 + $0x40] sm:$0xff]  ;;  %v243_v49 = vld [vmem:[#allocation8 + $0x38] sm:$0xff]  ;;  %v242_v51 = vld [vmem:[#allocation8 + $0x30] sm:$0xff] }
  0x45   :  { %283 = vmatpush1.msra.mxu0 %v252_v31  ;;  %732 = vmatpush1.msra.mxu1 %v220_v32  ;;  %v211_v50 = vld [vmem:[#allocation7 + $0x38] sm:$0xff]  ;;  %v210_v52 = vld [vmem:[#allocation7 + $0x30] sm:$0xff]  ;;  %v241_v53 = vld [vmem:[#allocation8 + $0x28] sm:$0xff] }
  0x46   :  { %284 = vmatprep.subr.mxu0 %v251_v33  ;;  %733 = vmatprep.subr.mxu1 %v219_v34  ;;  %v209_v54 = vld [vmem:[#allocation7 + $0x28] sm:$0xff]  ;;  %v240_v55 = vld [vmem:[#allocation8 + $0x20] sm:$0xff]  ;;  %v239_v57 = vld [vmem:[#allocation8 + $0x18] sm:$0xff] }
  0x47   :  { %285 = vmatpush1.msra.mxu0 %v250_v35  ;;  %734 = vmatpush1.msra.mxu1 %v218_v36  ;;  %v208_v56 = vld [vmem:[#allocation7 + $0x20] sm:$0xff]  ;;  %v207_v58 = vld [vmem:[#allocation7 + $0x18] sm:$0xff]  ;;  %v238_v59 = vld [vmem:[#allocation8 + $0x10] sm:$0xff] }
  0x48   :  { %286 = vmatprep.subr.mxu0 %v249_v37  ;;  %735 = vmatprep.subr.mxu1 %v217_v38  ;;  %v206_v60 = vld [vmem:[#allocation7 + $0x10] sm:$0xff]  ;;  %v237_v61 = vld [vmem:[#allocation8 + $0x8] sm:$0xff]  ;;  %v236_v63 = vld [vmem:[#allocation8] sm:$0xff] }
  0x49   :  { %287 = vmatpush1.msra.mxu0 %v248_v39  ;;  %736 = vmatpush1.msra.mxu1 %v216_v40  ;;  %v205_v62 = vld [vmem:[#allocation7 + $0x8] sm:$0xff]  ;;  %v204_v1 = vld [vmem:[#allocation7] sm:$0xff]  ;;  %v142_v6 = vld [vmem:[#allocation5 + $0x10] sm:$0xff] }
  0x4a   :  { %288 = vmatprep.subr.mxu0 %v247_v41  ;;  %737 = vmatprep.subr.mxu1 %v215_v42  ;;  %v140_v2 = vld [vmem:[#allocation5] sm:$0xff]  ;;  %v141_v4 = vld [vmem:[#allocation5 + $0x8] sm:$0xff]  ;;  %v2727_v7 = vld [vmem:[#allocation2 + $0x10] sm:$0xff] }
  0x4b   :  { %289 = vmatpush1.msra.mxu0 %v246_v43  ;;  %738 = vmatpush1.msra.mxu1 %v214_v44  ;;  %v2717_v3 = vld [vmem:[#allocation2] sm:$0xff]  ;;  %v2722_v5 = vld [vmem:[#allocation2 + $0x8] sm:$0xff]  ;;  %v143_v8 = vld [vmem:[#allocation5 + $0x18] sm:$0xff] }
  0x4c   :  { %290 = vmatprep.subr.mxu0 %v245_v45  ;;  %739 = vmatprep.subr.mxu1 %v213_v46  ;;  %v2732_v9 = vld [vmem:[#allocation2 + $0x18] sm:$0xff]  ;;  %v144_v10 = vld [vmem:[#allocation5 + $0x20] sm:$0xff]  ;;  %v145_v12 = vld [vmem:[#allocation5 + $0x28] sm:$0xff] }
  0x4d   :  { %291 = vmatpush1.msra.mxu0 %v244_v47  ;;  %740 = vmatpush1.msra.mxu1 %v212_v48  ;;  %v80_v11 = vld [vmem:[#allocation2 + $0x20] sm:$0xff]  ;;  %v81_v13 = vld [vmem:[#allocation2 + $0x28] sm:$0xff]  ;;  %v146_v14 = vld [vmem:[#allocation5 + $0x30] sm:$0xff] }
  0x4e   :  { %292 = vmatprep.subr.mxu0 %v243_v49  ;;  %741 = vmatprep.subr.mxu1 %v211_v50  ;;  %v82_v15 = vld [vmem:[#allocation2 + $0x30] sm:$0xff]  ;;  %v147_v16 = vld [vmem:[#allocation5 + $0x38] sm:$0xff]  ;;  %v148_v18 = vld [vmem:[#allocation5 + $0x40] sm:$0xff] }
  0x4f   :  { %293 = vmatpush1.msra.mxu0 %v242_v51  ;;  %742 = vmatpush1.msra.mxu1 %v210_v52  ;;  %v83_v17 = vld [vmem:[#allocation2 + $0x38] sm:$0xff]  ;;  %v84_v19 = vld [vmem:[#allocation2 + $0x40] sm:$0xff]  ;;  %v149_v20 = vld [vmem:[#allocation5 + $0x48] sm:$0xff] }
  0x50   :  { %294 = vmatprep.subr.mxu0 %v241_v53  ;;  %743 = vmatprep.subr.mxu1 %v209_v54  ;;  %v85_v21 = vld [vmem:[#allocation2 + $0x48] sm:$0xff]  ;;  %v150_v22 = vld [vmem:[#allocation5 + $0x50] sm:$0xff]  ;;  %v151_v24 = vld [vmem:[#allocation5 + $0x58] sm:$0xff] }
  0x51   :  { %295 = vmatpush1.msra.mxu0 %v240_v55  ;;  %744 = vmatpush1.msra.mxu1 %v208_v56  ;;  %v86_v23 = vld [vmem:[#allocation2 + $0x50] sm:$0xff]  ;;  %v87_v25 = vld [vmem:[#allocation2 + $0x58] sm:$0xff]  ;;  %v152_v26 = vld [vmem:[#allocation5 + $0x60] sm:$0xff] }
  0x52   :  { %296 = vmatprep.subr.mxu0 %v239_v57  ;;  %745 = vmatprep.subr.mxu1 %v207_v58  ;;  %v88_v27 = vld [vmem:[#allocation2 + $0x60] sm:$0xff]  ;;  %v153_v28 = vld [vmem:[#allocation5 + $0x68] sm:$0xff]  ;;  %v154_v30 = vld [vmem:[#allocation5 + $0x70] sm:$0xff] }
  0x53   :  { %297 = vmatpush1.msra.mxu0 %v238_v59  ;;  %746 = vmatpush1.msra.mxu1 %v206_v60  ;;  %v89_v29 = vld [vmem:[#allocation2 + $0x68] sm:$0xff]  ;;  %v90_v31 = vld [vmem:[#allocation2 + $0x70] sm:$0xff]  ;;  %v155_v32 = vld [vmem:[#allocation5 + $0x78] sm:$0xff] }
  0x54   :  { %298 = vmatprep.subr.mxu0 %v237_v61  ;;  %747 = vmatprep.subr.mxu1 %v205_v62  ;;  %v91_v33 = vld [vmem:[#allocation2 + $0x78] sm:$0xff]  ;;  %v156_v34 = vld [vmem:[#allocation5 + $0x80] sm:$0xff]  ;;  %v157_v36 = vld [vmem:[#allocation5 + $0x88] sm:$0xff] }
  0x55   :  { %299 = vmatpush1.msra.mxu0 %v236_v63  ;;  %748 = vmatpush1.msra.mxu1 %v204_v1  ;;  %v92_v35 = vld [vmem:[#allocation2 + $0x80] sm:$0xff]  ;;  %v93_v37 = vld [vmem:[#allocation2 + $0x88] sm:$0xff]  ;;  %v158_v38 = vld [vmem:[#allocation5 + $0x90] sm:$0xff] }
  0x56   :  { %333 = vmatmul.mubr.f32.vlgmr.msra.gmra.mxu0 %v140_v2  ;;  %782 = vmatmul.mubr.f32.vlgmr.msra.gmra.mxu1 %v2717_v3  ;;  %v94_v39 = vld [vmem:[#allocation2 + $0x90] sm:$0xff]  ;;  %v159_v40 = vld [vmem:[#allocation5 + $0x98] sm:$0xff]  ;;  %v160_v42 = vld [vmem:[#allocation5 + $0xa0] sm:$0xff] }
  0x57   :  { %338 = vmatprep.mubr.f32.mxu0 %v2665_v0  ;;  %787 = vmatprep.mubr.f32.mxu1 %v2665_v0  ;;  %v95_v41 = vld [vmem:[#allocation2 + $0x98] sm:$0xff]  ;;  %v96_v43 = vld [vmem:[#allocation2 + $0xa0] sm:$0xff]  ;;  %v161_v44 = vld [vmem:[#allocation5 + $0xa8] sm:$0xff] }
  0x58   :  { %v97_v45 = vld [vmem:[#allocation2 + $0xa8] sm:$0xff]  ;;  %v162_v46 = vld [vmem:[#allocation5 + $0xb0] sm:$0xff]  ;;  %v163_v48 = vld [vmem:[#allocation5 + $0xb8] sm:$0xff] }
  0x59   :  { %v98_v47 = vld [vmem:[#allocation2 + $0xb0] sm:$0xff]  ;;  %v99_v49 = vld [vmem:[#allocation2 + $0xb8] sm:$0xff]  ;;  %v164_v50 = vld [vmem:[#allocation5 + $0xc0] sm:$0xff] }
  0x5a   :  { %339 = vmatmul.mubr.f32.gmra.mxu0 %v141_v4  ;;  %788 = vmatmul.mubr.f32.gmra.mxu1 %v2722_v5  ;;  %v100_v51 = vld [vmem:[#allocation2 + $0xc0] sm:$0xff]  ;;  %v165_v52 = vld [vmem:[#allocation5 + $0xc8] sm:$0xff]  ;;  %v166_v54 = vld [vmem:[#allocation5 + $0xd0] sm:$0xff] }
  0x5b   :  { %344 = vmatprep.mubr.f32.mxu0 %v2665_v0  ;;  %793 = vmatprep.mubr.f32.mxu1 %v2665_v0  ;;  %v101_v53 = vld [vmem:[#allocation2 + $0xc8] sm:$0xff]  ;;  %v102_v55 = vld [vmem:[#allocation2 + $0xd0] sm:$0xff]  ;;  %v167_v56 = vld [vmem:[#allocation5 + $0xd8] sm:$0xff] }
  0x5c   :  { %v103_v57 = vld [vmem:[#allocation2 + $0xd8] sm:$0xff]  ;;  %v168_v58 = vld [vmem:[#allocation5 + $0xe0] sm:$0xff]  ;;  %v169_v60 = vld [vmem:[#allocation5 + $0xe8] sm:$0xff] }
  0x5d   :  { %v104_v59 = vld [vmem:[#allocation2 + $0xe0] sm:$0xff]  ;;  %v105_v61 = vld [vmem:[#allocation2 + $0xe8] sm:$0xff]  ;;  %v170_v62 = vld [vmem:[#allocation5 + $0xf0] sm:$0xff] }
  0x5e   :  { %345 = vmatmul.mubr.f32.gmra.mxu0 %v142_v6  ;;  %794 = vmatmul.mubr.f32.gmra.mxu1 %v2727_v7  ;;  %v106_v63 = vld [vmem:[#allocation2 + $0xf0] sm:$0xff]  ;;  %v171_v1 = vld [vmem:[#allocation5 + $0xf8] sm:$0xff]  ;;  %v172_v4 = vld [vmem:[#allocation5 + $0x100] sm:$0xff] }
  0x5f   :  { %350 = vmatprep.mubr.f32.mxu0 %v2665_v0  ;;  %799 = vmatprep.mubr.f32.mxu1 %v2665_v0  ;;  %v107_v2 = vld [vmem:[#allocation2 + $0xf8] sm:$0xff]  ;;  %v108_v6 = vld [vmem:[#allocation2 + $0x100] sm:$0xff] }
  0x62   :  { %351 = vmatmul.mubr.f32.gmra.mxu0 %v143_v8  ;;  %800 = vmatmul.mubr.f32.gmra.mxu1 %v2732_v9  ;;  %v173_v8 = vld [vmem:[#allocation5 + $0x108] sm:$0xff] }
  0x63   :  { %356 = vmatprep.mubr.f32.mxu0 %v2665_v0  ;;  %805 = vmatprep.mubr.f32.mxu1 %v2665_v0 }
  0x66   :  { %357 = vmatmul.mubr.f32.gmra.mxu0 %v144_v10  ;;  %806 = vmatmul.mubr.f32.gmra.mxu1 %v80_v11  ;;  %v109_v10 = vld [vmem:[#allocation2 + $0x108] sm:$0xff]  ;;  %v174_v11 = vld [vmem:[#allocation5 + $0x110] sm:$0xff] }
  0x67   :  { %362 = vmatprep.mubr.f32.mxu0 %v2665_v0  ;;  %811 = vmatprep.mubr.f32.mxu1 %v2665_v0 }
  0x6a   :  { %363 = vmatmul.mubr.f32.gmra.mxu0 %v145_v12  ;;  %812 = vmatmul.mubr.f32.gmra.mxu1 %v81_v13  ;;  %v110_v12 = vld [vmem:[#allocation2 + $0x110] sm:$0xff]  ;;  %v175_v13 = vld [vmem:[#allocation5 + $0x118] sm:$0xff] }
  0x6b   :  { %368 = vmatprep.mubr.f32.mxu0 %v2665_v0  ;;  %817 = vmatprep.mubr.f32.mxu1 %v2665_v0 }
  0x6e   :  { %369 = vmatmul.mubr.f32.gmra.mxu0 %v146_v14  ;;  %818 = vmatmul.mubr.f32.gmra.mxu1 %v82_v15  ;;  %v111_v14 = vld [vmem:[#allocation2 + $0x118] sm:$0xff]  ;;  %v176_v15 = vld [vmem:[#allocation5 + $0x120] sm:$0xff] }
  0x6f   :  { %374 = vmatprep.mubr.f32.mxu0 %v2665_v0  ;;  %823 = vmatprep.mubr.f32.mxu1 %v2665_v0 }
  0x72   :  { %375 = vmatmul.mubr.f32.gmra.mxu0 %v147_v16  ;;  %824 = vmatmul.mubr.f32.gmra.mxu1 %v83_v17  ;;  %v112_v16 = vld [vmem:[#allocation2 + $0x120] sm:$0xff]  ;;  %v177_v17 = vld [vmem:[#allocation5 + $0x128] sm:$0xff] }
  0x73   :  { %380 = vmatprep.mubr.f32.mxu0 %v2665_v0  ;;  %829 = vmatprep.mubr.f32.mxu1 %v2665_v0 }
  0x76   :  { %381 = vmatmul.mubr.f32.gmra.mxu0 %v148_v18  ;;  %830 = vmatmul.mubr.f32.gmra.mxu1 %v84_v19  ;;  %v113_v18 = vld [vmem:[#allocation2 + $0x128] sm:$0xff]  ;;  %v178_v19 = vld [vmem:[#allocation5 + $0x130] sm:$0xff] }
  0x77   :  { %386 = vmatprep.mubr.f32.mxu0 %v2665_v0  ;;  %835 = vmatprep.mubr.f32.mxu1 %v2665_v0 }
  0x7a   :  { %387 = vmatmul.mubr.f32.gmra.mxu0 %v149_v20  ;;  %836 = vmatmul.mubr.f32.gmra.mxu1 %v85_v21  ;;  %v114_v20 = vld [vmem:[#allocation2 + $0x130] sm:$0xff]  ;;  %v179_v21 = vld [vmem:[#allocation5 + $0x138] sm:$0xff] }
  0x7b   :  { %392 = vmatprep.mubr.f32.mxu0 %v2665_v0  ;;  %841 = vmatprep.mubr.f32.mxu1 %v2665_v0 }
  0x7e   :  { %393 = vmatmul.mubr.f32.gmra.mxu0 %v150_v22  ;;  %842 = vmatmul.mubr.f32.gmra.mxu1 %v86_v23  ;;  %v115_v22 = vld [vmem:[#allocation2 + $0x138] sm:$0xff]  ;;  %v180_v23 = vld [vmem:[#allocation5 + $0x140] sm:$0xff] }
  0x7f   :  { %398 = vmatprep.mubr.f32.mxu0 %v2665_v0  ;;  %847 = vmatprep.mubr.f32.mxu1 %v2665_v0 }
  0x82   :  { %399 = vmatmul.mubr.f32.gmra.mxu0 %v151_v24  ;;  %848 = vmatmul.mubr.f32.gmra.mxu1 %v87_v25  ;;  %v116_v24 = vld [vmem:[#allocation2 + $0x140] sm:$0xff]  ;;  %v181_v25 = vld [vmem:[#allocation5 + $0x148] sm:$0xff] }
  0x83   :  { %404 = vmatprep.mubr.f32.mxu0 %v2665_v0  ;;  %853 = vmatprep.mubr.f32.mxu1 %v2665_v0 }
  0x86   :  { %405 = vmatmul.mubr.f32.gmra.mxu0 %v152_v26  ;;  %854 = vmatmul.mubr.f32.gmra.mxu1 %v88_v27  ;;  %v117_v26 = vld [vmem:[#allocation2 + $0x148] sm:$0xff]  ;;  %v182_v27 = vld [vmem:[#allocation5 + $0x150] sm:$0xff] }
  0x87   :  { %410 = vmatprep.mubr.f32.mxu0 %v2665_v0  ;;  %859 = vmatprep.mubr.f32.mxu1 %v2665_v0 }
  0x8a   :  { %411 = vmatmul.mubr.f32.gmra.mxu0 %v153_v28  ;;  %860 = vmatmul.mubr.f32.gmra.mxu1 %v89_v29  ;;  %v118_v28 = vld [vmem:[#allocation2 + $0x150] sm:$0xff]  ;;  %v183_v29 = vld [vmem:[#allocation5 + $0x158] sm:$0xff] }
  0x8b   :  { %416 = vmatprep.mubr.f32.mxu0 %v2665_v0  ;;  %865 = vmatprep.mubr.f32.mxu1 %v2665_v0 }
  0x8e   :  { %417 = vmatmul.mubr.f32.gmra.mxu0 %v154_v30  ;;  %866 = vmatmul.mubr.f32.gmra.mxu1 %v90_v31  ;;  %v119_v30 = vld [vmem:[#allocation2 + $0x158] sm:$0xff]  ;;  %v184_v31 = vld [vmem:[#allocation5 + $0x160] sm:$0xff] }
  0x8f   :  { %422 = vmatprep.mubr.f32.mxu0 %v2665_v0  ;;  %871 = vmatprep.mubr.f32.mxu1 %v2665_v0 }
  0x92   :  { %423 = vmatmul.mubr.f32.gmra.mxu0 %v155_v32  ;;  %872 = vmatmul.mubr.f32.gmra.mxu1 %v91_v33  ;;  %v120_v32 = vld [vmem:[#allocation2 + $0x160] sm:$0xff]  ;;  %v185_v33 = vld [vmem:[#allocation5 + $0x168] sm:$0xff] }
  0x93   :  { %428 = vmatprep.mubr.f32.mxu0 %v2665_v0  ;;  %877 = vmatprep.mubr.f32.mxu1 %v2665_v0 }
  0x96   :  { %429 = vmatmul.mubr.f32.gmra.mxu0 %v156_v34  ;;  %878 = vmatmul.mubr.f32.gmra.mxu1 %v92_v35  ;;  %v121_v34 = vld [vmem:[#allocation2 + $0x168] sm:$0xff]  ;;  %v186_v35 = vld [vmem:[#allocation5 + $0x170] sm:$0xff] }
  0x97   :  { %434 = vmatprep.mubr.f32.mxu0 %v2665_v0  ;;  %883 = vmatprep.mubr.f32.mxu1 %v2665_v0 }
  0x9a   :  { %435 = vmatmul.mubr.f32.gmra.mxu0 %v157_v36  ;;  %884 = vmatmul.mubr.f32.gmra.mxu1 %v93_v37  ;;  %v122_v36 = vld [vmem:[#allocation2 + $0x170] sm:$0xff]  ;;  %v1168_v37 = vlaneseq }
  0x9b   :  { %440 = vmatprep.mubr.f32.mxu0 %v2665_v0  ;;  %889 = vmatprep.mubr.f32.mxu1 %v2665_v0 }
  0x9e   :  { %441 = vmatmul.mubr.f32.gmra.mxu0 %v158_v38  ;;  %890 = vmatmul.mubr.f32.gmra.mxu1 %v94_v39  ;;  %v187_v38 = vld [vmem:[#allocation5 + $0x178] sm:$0xff] }
  0x9f   :  { %446 = vmatprep.mubr.f32.mxu0 %v2665_v0  ;;  %895 = vmatprep.mubr.f32.mxu1 %v2665_v0  ;;  %v123_v39 = vld [vmem:[#allocation2 + $0x178] sm:$0xff] }
  0xa2   :  { %447 = vmatmul.mubr.f32.gmra.mxu0 %v159_v40  ;;  %896 = vmatmul.mubr.f32.gmra.mxu1 %v95_v41  ;;  %v1169_v40 = vshrl.u32 %v1168_v37, 7  ;;  %v188_v41 = vld [vmem:[#allocation5 + $0x180] sm:$0xff] }
  0xa3   :  { %452 = vmatprep.mubr.f32.mxu0 %v2665_v0  ;;  %901 = vmatprep.mubr.f32.mxu1 %v2665_v0 }
  0xa6   :  { %453 = vmatmul.mubr.f32.gmra.mxu0 %v160_v42  ;;  %902 = vmatmul.mubr.f32.gmra.mxu1 %v96_v43  ;;  %v124_v42 = vld [vmem:[#allocation2 + $0x180] sm:$0xff]  ;;  %v1174_v43 = vsub.s32 1, %v1169_v40 }
  0xa7   :  { %458 = vmatprep.mubr.f32.mxu0 %v2665_v0  ;;  %907 = vmatprep.mubr.f32.mxu1 %v2665_v0 }
  0xaa   :  { %459 = vmatmul.mubr.f32.gmra.mxu0 %v161_v44  ;;  %908 = vmatmul.mubr.f32.gmra.mxu1 %v97_v45 }
  0xab   :  { %464 = vmatprep.mubr.f32.mxu0 %v2665_v0  ;;  %913 = vmatprep.mubr.f32.mxu1 %v2665_v0 }
  0xae   :  { %465 = vmatmul.mubr.f32.gmra.mxu0 %v162_v46  ;;  %914 = vmatmul.mubr.f32.gmra.mxu1 %v98_v47  ;;  %v1166_v46 = vld [vmem:[%s3153_s4] sm:$0x3]  ;;  %s2666_s4 = smov [#allocation10]  }
  0xaf   :  { %470 = vmatprep.mubr.f32.mxu0 %v2665_v0  ;;  %919 = vmatprep.mubr.f32.mxu1 %v2665_v0  ;;  %v2828_v47 = vrot.slane %v1166_v46, %v1174_v43  ;;  %s2015_s15 = sshll.u32 %s2666_s4, 4  ;;  %s2016_s15 = int_to_ptr.vmem [resolvable:$true] %s2015_s15 }
  0xb0   :  { %s2629_s16 = scalar_lea.vmem %s2016_s15, 8192  ;;  %p2634_p7 = scmp.lt.s32.totalorder %s2016_s15, %s2016_s15 }
  0xb1   :  { %p2630_p6 = scmp.ne.s32.totalorder %s2016_s15, %s2629_s16  ;;  %p2635_p8 = scmp.lt.s32.totalorder %s2629_s16, %s2629_s16 }
  0xb2   :  { %471 = vmatmul.mubr.f32.gmra.mxu0 %v163_v48  ;;  %920 = vmatmul.mubr.f32.gmra.mxu1 %v99_v49  ;;  %v189_v48 = vld [vmem:[#allocation5 + $0x188] sm:$0xff] }
  0xb3   :  { %476 = vmatprep.mubr.f32.mxu0 %v2665_v0  ;;  %925 = vmatprep.mubr.f32.mxu1 %v2665_v0  ;;  %v125_v49 = vld [vmem:[#allocation2 + $0x188] sm:$0xff]  ;;  %p2636_p9 = por %p2635_p8, %p2634_p7 }
  0xb5   :  { %p2637_p10 = pnand %p2636_p9, %p2630_p6 }
  0xb6   :  { %477 = vmatmul.mubr.f32.gmra.mxu0 %v164_v50  ;;  %926 = vmatmul.mubr.f32.gmra.mxu1 %v100_v51 }
  0xb7   :  { %482 = vmatprep.mubr.f32.mxu0 %v2665_v0  ;;  %931 = vmatprep.mubr.f32.mxu1 %v2665_v0 }
  0xba   :  { %483 = vmatmul.mubr.f32.gmra.mxu0 %v165_v52  ;;  %932 = vmatmul.mubr.f32.gmra.mxu1 %v101_v53 }
  0xbb   :  { %488 = vmatprep.mubr.f32.mxu0 %v2665_v0  ;;  %937 = vmatprep.mubr.f32.mxu1 %v2665_v0 }
  0xbe   :  { %489 = vmatmul.mubr.f32.gmra.mxu0 %v166_v54  ;;  %938 = vmatmul.mubr.f32.gmra.mxu1 %v102_v55 }
  0xbf   :  { %494 = vmatprep.mubr.f32.mxu0 %v2665_v0  ;;  %943 = vmatprep.mubr.f32.mxu1 %v2665_v0 }
  0xc2   :  { %495 = vmatmul.mubr.f32.gmra.mxu0 %v167_v56  ;;  %944 = vmatmul.mubr.f32.gmra.mxu1 %v103_v57  ;;  %v190_v56 = vld [vmem:[#allocation5 + $0x190] sm:$0xff] }
  0xc3   :  { %500 = vmatprep.mubr.f32.mxu0 %v2665_v0  ;;  %949 = vmatprep.mubr.f32.mxu1 %v2665_v0  ;;  %v126_v57 = vld [vmem:[#allocation2 + $0x190] sm:$0xff] }
  0xc6   :  { %501 = vmatmul.mubr.f32.gmra.mxu0 %v168_v58  ;;  %950 = vmatmul.mubr.f32.gmra.mxu1 %v104_v59 }
  0xc7   :  { %506 = vmatprep.mubr.f32.mxu0 %v2665_v0  ;;  %955 = vmatprep.mubr.f32.mxu1 %v2665_v0 }
  0xca   :  { %507 = vmatmul.mubr.f32.gmra.mxu0 %v169_v60  ;;  %956 = vmatmul.mubr.f32.gmra.mxu1 %v105_v61 }
  0xcb   :  { %512 = vmatprep.mubr.f32.mxu0 %v2665_v0  ;;  %961 = vmatprep.mubr.f32.mxu1 %v2665_v0 }
  0xce   :  { %513 = vmatmul.mubr.f32.gmra.mxu0 %v170_v62  ;;  %962 = vmatmul.mubr.f32.gmra.mxu1 %v106_v63  ;;  %v1170_v62 = vsub.s32 0, %v1169_v40  ;;  %v194_v40 = vld [vmem:[#allocation5 + $0x1b0] sm:$0xff] }
  0xcf   :  { %518 = vmatprep.mubr.f32.mxu0 %v2665_v0  ;;  %967 = vmatprep.mubr.f32.mxu1 %v2665_v0 }
  0xd2   :  { %519 = vmatmul.mubr.f32.gmra.mxu0 %v171_v1  ;;  %968 = vmatmul.mubr.f32.gmra.mxu1 %v107_v2 }
  0xd3   :  { %524 = vmatprep.mubr.f32.mxu0 %v2665_v0  ;;  %973 = vmatprep.mubr.f32.mxu1 %v2665_v0 }
  0xd6   :  { %525 = vmatmul.mubr.f32.gmra.mxu0 %v172_v4  ;;  %974 = vmatmul.mubr.f32.gmra.mxu1 %v108_v6  ;;  %v191_v4 = vld [vmem:[#allocation5 + $0x198] sm:$0xff] }
  0xd7   :  { %530 = vmatprep.mubr.f32.mxu0 %v2665_v0  ;;  %979 = vmatprep.mubr.f32.mxu1 %v2665_v0  ;;  %v127_v6 = vld [vmem:[#allocation2 + $0x198] sm:$0xff] }
  0xda   :  { %531 = vmatmul.mubr.f32.gmra.mxu0 %v173_v8  ;;  %980 = vmatmul.mubr.f32.gmra.mxu1 %v109_v10 }
  0xdb   :  { %536 = vmatprep.mubr.f32.mxu0 %v2665_v0  ;;  %985 = vmatprep.mubr.f32.mxu1 %v2665_v0 }
  0xde   :  { %537 = vmatmul.mubr.f32.gmra.mxu0 %v174_v11  ;;  %986 = vmatmul.mubr.f32.gmra.mxu1 %v110_v12 }
  0xdf   :  { %542 = vmatprep.mubr.f32.mxu0 %v2665_v0  ;;  %991 = vmatprep.mubr.f32.mxu1 %v2665_v0 }
  0xe2   :  { %543 = vmatmul.mubr.f32.gmra.mxu0 %v175_v13  ;;  %992 = vmatmul.mubr.f32.gmra.mxu1 %v111_v14  ;;  %v2838_v14 = vrot.slane %v1166_v46, %v1170_v62 }
  0xe3   :  { %548 = vmatprep.mubr.f32.mxu0 %v2665_v0  ;;  %997 = vmatprep.mubr.f32.mxu1 %v2665_v0 }
  0xe6   :  { %549 = vmatmul.mubr.f32.gmra.mxu0 %v176_v15  ;;  %998 = vmatmul.mubr.f32.gmra.mxu1 %v112_v16 }
  0xe7   :  { %554 = vmatprep.mubr.f32.mxu0 %v2665_v0  ;;  %1003 = vmatprep.mubr.f32.mxu1 %v2665_v0 }
  0xea   :  { %555 = vmatmul.mubr.f32.gmra.mxu0 %v177_v17  ;;  %1004 = vmatmul.mubr.f32.gmra.mxu1 %v113_v18  ;;  %v192_v18 = vld [vmem:[#allocation5 + $0x1a0] sm:$0xff] }
  0xeb   :  { %560 = vmatprep.mubr.f32.mxu0 %v2665_v0  ;;  %1009 = vmatprep.mubr.f32.mxu1 %v2665_v0 }
  0xee   :  { %561 = vmatmul.mubr.f32.gmra.mxu0 %v178_v19  ;;  %1010 = vmatmul.mubr.f32.gmra.mxu1 %v114_v20  ;;  %v128_v19 = vld [vmem:[#allocation2 + $0x1a0] sm:$0xff] }
  0xef   :  { %566 = vmatprep.mubr.f32.mxu0 %v2665_v0  ;;  %1015 = vmatprep.mubr.f32.mxu1 %v2665_v0 }
  0xf2   :  { %567 = vmatmul.mubr.f32.gmra.mxu0 %v179_v21  ;;  %1016 = vmatmul.mubr.f32.gmra.mxu1 %v115_v22 }
  0xf3   :  { %572 = vmatprep.mubr.f32.mxu0 %v2665_v0  ;;  %1021 = vmatprep.mubr.f32.mxu1 %v2665_v0 }
  0xf6   :  { %573 = vmatmul.mubr.f32.gmra.mxu0 %v180_v23  ;;  %1022 = vmatmul.mubr.f32.gmra.mxu1 %v116_v24 }
  0xf7   :  { %578 = vmatprep.mubr.f32.mxu0 %v2665_v0  ;;  %1027 = vmatprep.mubr.f32.mxu1 %v2665_v0 }
  0xfa   :  { %579 = vmatmul.mubr.f32.gmra.mxu0 %v181_v25  ;;  %1028 = vmatmul.mubr.f32.gmra.mxu1 %v117_v26 }
  0xfb   :  { %584 = vmatprep.mubr.f32.mxu0 %v2665_v0  ;;  %1033 = vmatprep.mubr.f32.mxu1 %v2665_v0 }
  0xfe   :  { %585 = vmatmul.mubr.f32.gmra.mxu0 %v182_v27  ;;  %1034 = vmatmul.mubr.f32.gmra.mxu1 %v118_v28 }
  0xff   :  { %590 = vmatprep.mubr.f32.mxu0 %v2665_v0  ;;  %1039 = vmatprep.mubr.f32.mxu1 %v2665_v0 }
 0x102   :  { %591 = vmatmul.mubr.f32.gmra.mxu0 %v183_v29  ;;  %1040 = vmatmul.mubr.f32.gmra.mxu1 %v119_v30  ;;  %v193_v29 = vld [vmem:[#allocation5 + $0x1a8] sm:$0xff] }
 0x103   :  { %596 = vmatprep.mubr.f32.mxu0 %v2665_v0  ;;  %1045 = vmatprep.mubr.f32.mxu1 %v2665_v0  ;;  %v129_v30 = vld [vmem:[#allocation2 + $0x1a8] sm:$0xff] }
 0x106   :  { %597 = vmatmul.mubr.f32.gmra.mxu0 %v184_v31  ;;  %1046 = vmatmul.mubr.f32.gmra.mxu1 %v120_v32 }
 0x107   :  { %602 = vmatprep.mubr.f32.mxu0 %v2665_v0  ;;  %1051 = vmatprep.mubr.f32.mxu1 %v2665_v0 }
 0x10a   :  { %603 = vmatmul.mubr.f32.gmra.mxu0 %v185_v33  ;;  %1052 = vmatmul.mubr.f32.gmra.mxu1 %v121_v34 }
 0x10b   :  { %608 = vmatprep.mubr.f32.mxu0 %v2665_v0  ;;  %1057 = vmatprep.mubr.f32.mxu1 %v2665_v0 }
 0x10e   :  { %609 = vmatmul.mubr.f32.gmra.mxu0 %v186_v35  ;;  %1058 = vmatmul.mubr.f32.gmra.mxu1 %v122_v36 }
 0x10f   :  { %614 = vmatprep.mubr.f32.mxu0 %v2665_v0  ;;  %1063 = vmatprep.mubr.f32.mxu1 %v2665_v0 }
 0x112   :  { %615 = vmatmul.mubr.f32.gmra.mxu0 %v187_v38  ;;  %1064 = vmatmul.mubr.f32.gmra.mxu1 %v123_v39 }
 0x113   :  { %620 = vmatprep.mubr.f32.mxu0 %v2665_v0  ;;  %1069 = vmatprep.mubr.f32.mxu1 %v2665_v0 }
 0x116   :  { %v334_v44 = vpop.f32.mrf.mxu0  ;;  %621 = vmatmul.mubr.f32.gmra.mxu0 %v188_v41  ;;  %v783_v45 = vpop.f32.mrf.mxu1  ;;  %1070 = vmatmul.mubr.f32.gmra.mxu1 %v124_v42  ;;  %v130_v41 = vld [vmem:[#allocation2 + $0x1b0] sm:$0xff] }
 0x117   :  { %626 = vmatprep.mubr.f32.mxu0 %v2665_v0  ;;  %1075 = vmatprep.mubr.f32.mxu1 %v2665_v0  ;;  %v784_v13 = vadd.f32 %v783_v45, %v334_v44 }
 0x118   :  { %v336_v50 = vpop.f32.mrf.mxu0  ;;  %v785_v51 = vpop.f32.mrf.mxu1 }
 0x119   :  { %v786_v52 = vadd.f32 %v785_v51, %v336_v50  ;;  %v1178_v24 = vadd.f32 %v2838_v14, %v784_v13 }
 0x11a   :  { %v340_v53 = vpop.f32.mrf.mxu0  ;;  %627 = vmatmul.mubr.f32.gmra.mxu0 %v189_v48  ;;  %v789_v54 = vpop.f32.mrf.mxu1  ;;  %1076 = vmatmul.mubr.f32.gmra.mxu1 %v125_v49 }
 0x11b   :  { %v1179_v55 = vadd.f32 %v2828_v47, %v786_v52  ;;  %632 = vmatprep.mubr.f32.mxu0 %v2665_v0  ;;  %1081 = vmatprep.mubr.f32.mxu1 %v2665_v0  ;;  %v790_v25 = vadd.f32 %v789_v54, %v340_v53  ;;  %v195_v54 = vld [vmem:[#allocation5 + $0x1b8] sm:$0xff] }
 0x11c   :  { %v342_v58 = vpop.f32.mrf.mxu0  ;;  %v791_v59 = vpop.f32.mrf.mxu1 }
 0x11d   :  { %v2029_v60 = vmul.f32 -1.442695, %v1179_v55  ;;  %v792_v61 = vadd.f32 %v791_v59, %v342_v58  ;;  %v1180_v35 = vadd.f32 %v2838_v14, %v790_v25  ;;  %v131_v55 = vld [vmem:[#allocation2 + $0x1b8] sm:$0xff] }
 0x11e   :  { %v346_v63 = vpop.f32.mrf.mxu0  ;;  %633 = vmatmul.mubr.f32.gmra.mxu0 %v190_v56  ;;  %v795_v1 = vpop.f32.mrf.mxu1  ;;  %1082 = vmatmul.mubr.f32.gmra.mxu1 %v126_v57 }
 0x11f   :  { %2103 = vpow2.f32 %v2029_v60  ;;  %v1181_v2 = vadd.f32 %v2828_v47, %v792_v61  ;;  %638 = vmatprep.mubr.f32.mxu0 %v2665_v0  ;;  %1087 = vmatprep.mubr.f32.mxu1 %v2665_v0  ;;  %v796_v36 = vadd.f32 %v795_v1, %v346_v63 }
 0x120   :  { %v348_v8 = vpop.f32.mrf.mxu0  ;;  %v797_v10 = vpop.f32.mrf.mxu1 }
 0x121   :  { %v2030_v11 = vmul.f32 -1.442695, %v1181_v2  ;;  %v798_v12 = vadd.f32 %v797_v10, %v348_v8  ;;  %v1182_v49 = vadd.f32 %v2838_v14, %v796_v36 }
 0x122   :  { %v352_v15 = vpop.f32.mrf.mxu0  ;;  %639 = vmatmul.mubr.f32.gmra.mxu0 %v191_v4  ;;  %v801_v16 = vpop.f32.mrf.mxu1  ;;  %1088 = vmatmul.mubr.f32.gmra.mxu1 %v127_v6  ;;  %v196_v4 = vld [vmem:[#allocation5 + $0x1c0] sm:$0xff] }
 0x123   :  { %2105 = vpow2.f32 %v2030_v11  ;;  %v1183_v17 = vadd.f32 %v2828_v47, %v798_v12  ;;  %644 = vmatprep.mubr.f32.mxu0 %v2665_v0  ;;  %1093 = vmatprep.mubr.f32.mxu1 %v2665_v0  ;;  %v802_v50 = vadd.f32 %v801_v16, %v352_v15  ;;  %v132_v6 = vld [vmem:[#allocation2 + $0x1c0] sm:$0xff] }
 0x124   :  { %v354_v20 = vpop.f32.mrf.mxu0  ;;  %v803_v21 = vpop.f32.mrf.mxu1 }
 0x125   :  { %v2031_v22 = vmul.f32 -1.442695, %v1183_v17  ;;  %v804_v23 = vadd.f32 %v803_v21, %v354_v20  ;;  %v1184_v61 = vadd.f32 %v2838_v14, %v802_v50 }
 0x126   :  { %v358_v26 = vpop.f32.mrf.mxu0  ;;  %645 = vmatmul.mubr.f32.gmra.mxu0 %v192_v18  ;;  %v807_v27 = vpop.f32.mrf.mxu1  ;;  %1094 = vmatmul.mubr.f32.gmra.mxu1 %v128_v19 }
 0x127   :  { %2107 = vpow2.f32 %v2031_v22  ;;  %v1185_v28 = vadd.f32 %v2828_v47, %v804_v23  ;;  %650 = vmatprep.mubr.f32.mxu0 %v2665_v0  ;;  %1099 = vmatprep.mubr.f32.mxu1 %v2665_v0  ;;  %v808_v62 = vadd.f32 %v807_v27, %v358_v26  ;;  %v197_v23 = vld [vmem:[#allocation5 + $0x1c8] sm:$0xff] }
 0x128   :  { %v360_v31 = vpop.f32.mrf.mxu0  ;;  %v809_v32 = vpop.f32.mrf.mxu1  ;;  %2109 = vtanh.f32 %v1178_v24  ;;  %v133_v24 = vld [vmem:[#allocation2 + $0x1c8] sm:$0xff] }
 0x129   :  { %v2032_v33 = vmul.f32 -1.442695, %v1185_v28  ;;  %v810_v34 = vadd.f32 %v809_v32, %v360_v31  ;;  %v1186_v16 = vadd.f32 %v2838_v14, %v808_v62 }
 0x12a   :  { %v2848_v37 = vpop.f32.mrf.mxu0  ;;  %651 = vmatmul.mubr.f32.gmra.mxu0 %v193_v29  ;;  %v813_v38 = vpop.f32.mrf.mxu1  ;;  %1100 = vmatmul.mubr.f32.gmra.mxu1 %v129_v30 }
 0x12b   :  { %2111 = vpow2.f32 %v2032_v33  ;;  %v1187_v39 = vadd.f32 %v2828_v47, %v810_v34  ;;  %656 = vmatprep.mubr.f32.mxu0 %v2665_v0  ;;  %1105 = vmatprep.mubr.f32.mxu1 %v2665_v0  ;;  %v814_v21 = vadd.f32 %v813_v38, %v2848_v37  ;;  %v198_v37 = vld [vmem:[#allocation5 + $0x1d0] sm:$0xff] }
 0x12c   :  { %v2104_v42 = vpop.eup %2103  ;;  %v366_v43 = vpop.f32.mrf.mxu0  ;;  %2113 = vtanh.f32 %v1180_v35  ;;  %v134_v38 = vld [vmem:[#allocation2 + $0x1d0] sm:$0xff] }
 0x12d   :  { %v815_v44 = vpop.f32.mrf.mxu1  ;;  %v1562_v45 = vadd.f32 1.0, %v2104_v42  ;;  %v2033_v46 = vmul.f32 -1.442695, %v1187_v39  ;;  %v1188_v36 = vadd.f32 %v2838_v14, %v814_v21 }
 0x12e   :  { %v816_v48 = vadd.f32 %v815_v44, %v366_v43  ;;  %v370_v51 = vpop.f32.mrf.mxu0  ;;  %657 = vmatmul.mubr.f32.gmra.mxu0 %v194_v40  ;;  %1106 = vmatmul.mubr.f32.gmra.mxu1 %v130_v41 }
 0x12f   :  { %v819_v52 = vpop.f32.mrf.mxu1  ;;  %2115 = vrcp.f32 %v1562_v45  ;;  %662 = vmatprep.mubr.f32.mxu0 %v2665_v0  ;;  %1111 = vmatprep.mubr.f32.mxu1 %v2665_v0 }
 0x130   :  { %v1189_v53 = vadd.f32 %v2828_v47, %v816_v48  ;;  %v2106_v56 = vpop.eup %2105  ;;  %2117 = vpow2.f32 %v2033_v46  ;;  %v372_v57 = vpop.f32.mrf.mxu0  ;;  %v820_v30 = vadd.f32 %v819_v52, %v370_v51 }
 0x131   :  { %v821_v58 = vpop.f32.mrf.mxu1  ;;  %v1563_v59 = vadd.f32 1.0, %v2106_v56  ;;  %2119 = vtanh.f32 %v1182_v49 }
 0x132   :  { %v2034_v60 = vmul.f32 -1.442695, %v1189_v53  ;;  %v822_v63 = vadd.f32 %v821_v58, %v372_v57  ;;  %v376_v1 = vpop.f32.mrf.mxu0  ;;  %663 = vmatmul.mubr.f32.gmra.mxu0 %v195_v54  ;;  %1112 = vmatmul.mubr.f32.gmra.mxu1 %v131_v55  ;;  %v1190_v48 = vadd.f32 %v2838_v14, %v820_v30  ;;  %v199_v57 = vld [vmem:[#allocation5 + $0x1d8] sm:$0xff]  ;;  %v2487_v30 = vld [vmem:[#allocation2 + $0x10] sm:$0xff] }
 0x133   :  { %v825_v2 = vpop.f32.mrf.mxu1  ;;  %2121 = vrcp.f32 %v1563_v59  ;;  %668 = vmatprep.mubr.f32.mxu0 %v2665_v0  ;;  %1117 = vmatprep.mubr.f32.mxu1 %v2665_v0  ;;  %v135_v58 = vld [vmem:[#allocation2 + $0x1d8] sm:$0xff] }
 0x134   :  { %v2108_v8 = vpop.eup %2107  ;;  %2123 = vpow2.f32 %v2034_v60  ;;  %v1191_v10 = vadd.f32 %v2828_v47, %v822_v63  ;;  %v378_v11 = vpop.f32.mrf.mxu0  ;;  %v826_v49 = vadd.f32 %v825_v2, %v376_v1 }
 0x135   :  { %v827_v12 = vpop.f32.mrf.mxu1  ;;  %v1564_v13 = vadd.f32 1.0, %v2108_v8  ;;  %2125 = vtanh.f32 %v1184_v61  ;;  %v2110_v20 = vpop.eup %2109 }
 0x136   :  { %v828_v15 = vadd.f32 %v827_v12, %v378_v11  ;;  %v2035_v17 = vmul.f32 -1.442695, %v1191_v10  ;;  %v2862_v18 = vpop.f32.mrf.mxu0  ;;  %669 = vmatmul.mubr.f32.gmra.mxu0 %v196_v4  ;;  %1118 = vmatmul.mubr.f32.gmra.mxu1 %v132_v6  ;;  %v1754_v35 = vsub.f32 %v2110_v20, %v2717_v3  ;;  %v1192_v4 = vadd.f32 %v2838_v14, %v826_v49 }
 0x137   :  { %v2864_v19 = vpop.f32.mrf.mxu1  ;;  %2127 = vrcp.f32 %v1564_v13  ;;  %674 = vmatprep.mubr.f32.mxu0 %v2665_v0  ;;  %1123 = vmatprep.mubr.f32.mxu1 %v2665_v0 }
 0x138   :  { %v1193_v22 = vadd.f32 %v2828_v47, %v828_v15  ;;  %v2112_v25 = vpop.eup %2111  ;;  %2129 = vpow2.f32 %v2035_v17  ;;  %v384_v26 = vpop.f32.mrf.mxu0  ;;  %v200_v15 = vld [vmem:[#allocation5 + $0x1e0] sm:$0xff] }
 0x139   :  { %v833_v27 = vpop.f32.mrf.mxu1  ;;  %v1565_v28 = vadd.f32 1.0, %v2112_v25  ;;  %2131 = vtanh.f32 %v1186_v16  ;;  %v2114_v34 = vpop.eup %2113  ;;  %v136_v16 = vld [vmem:[#allocation2 + $0x1e0] sm:$0xff] }
 0x13a   :  { %v2036_v29 = vmul.f32 -1.442695, %v1193_v22  ;;  %v834_v31 = vadd.f32 %v833_v27, %v384_v26  ;;  %v2870_v32 = vpop.f32.mrf.mxu0  ;;  %675 = vmatmul.mubr.f32.gmra.mxu0 %v197_v23  ;;  %1124 = vmatmul.mubr.f32.gmra.mxu1 %v133_v24  ;;  %v1755_v55 = vsub.f32 %v2114_v34, %v2722_v5 }
 0x13b   :  { %v2872_v33 = vpop.f32.mrf.mxu1  ;;  %2133 = vrcp.f32 %v1565_v28  ;;  %680 = vmatprep.mubr.f32.mxu0 %v2665_v0  ;;  %1129 = vmatprep.mubr.f32.mxu1 %v2665_v0 }
 0x13c   :  { %v2116_v39 = vpop.eup %2115  ;;  %2135 = vpow2.f32 %v2036_v29  ;;  %v1195_v40 = vadd.f32 %v2828_v47, %v834_v31  ;;  %v390_v41 = vpop.f32.mrf.mxu0  ;;  %v838_v26 = vadd.f32 %v2872_v33, %v2870_v32  ;;  %v137_v32 = vld [vmem:[#allocation2 + $0x1e8] sm:$0xff] }
 0x13d   :  { %v839_v42 = vpop.f32.mrf.mxu1  ;;  %v2118_v43 = vpop.eup %2117  ;;  %v1818_v44 = vmul.f32 %v2116_v39, %v1754_v35  ;;  %2137 = vtanh.f32 %v1188_v36 }
 0x13e   :  { %v840_v45 = vadd.f32 %v839_v42, %v390_v41  ;;  %v1566_v46 = vadd.f32 1.0, %v2118_v43  ;;  %v2037_v50 = vmul.f32 -1.442695, %v1195_v40  ;;  %v2880_v51 = vpop.f32.mrf.mxu0  ;;  %681 = vmatmul.mubr.f32.gmra.mxu0 %v198_v37  ;;  %1130 = vmatmul.mubr.f32.gmra.mxu1 %v134_v38  ;;  %v2120_v53 = vpop.eup %2119  ;;  %v1196_v42 = vadd.f32 %v2838_v14, %v838_v26 }
 0x13f   :  { %v2882_v52 = vpop.f32.mrf.mxu1  ;;  %v1882_v54 = vadd.f32 %v1818_v44, %v2717_v3  ;;  %686 = vmatprep.mubr.f32.mxu0 %v2665_v0  ;;  %1135 = vmatprep.mubr.f32.mxu1 %v2665_v0  ;;  %v1756_v12 = vsub.f32 %v2120_v53, %v2727_v7  ;;  %v138_v53 = vld [vmem:[#allocation2 + $0x1f0] sm:$0xff] }
 0x140   :  { %v1197_v56 = vadd.f32 %v2828_v47, %v840_v45  ;;  %v2122_v59 = vpop.eup %2121  ;;  %2139 = vrcp.f32 %v1566_v46  ;;  %v396_v60 = vpop.f32.mrf.mxu0  ;;  %v844_v43 = vadd.f32 %v2882_v52, %v2880_v51  ;;  %v2488_v46 = vld [vmem:[#allocation2 + $0x18] sm:$0xff] }
 0x141   :  { %v845_v61 = vpop.f32.mrf.mxu1  ;;  %v2124_v62 = vpop.eup %2123  ;;  %1946 = vst [vmem:[#allocation10] sm:$0xff] %v1882_v54  ;;  %v1819_v63 = vmul.f32 %v2122_v59, %v1755_v55  ;;  %2141 = vpow2.f32 %v2037_v50  ;;  %v202_v50 = vld [vmem:[#allocation5 + $0x1f0] sm:$0xff]  ;;  %v2489_v55 = vld [vmem:[#allocation2 + $0x20] sm:$0xff] }
 0x142   :  { %v2038_v3 = vmul.f32 -1.442695, %v1197_v56  ;;  %v846_v1 = vadd.f32 %v845_v61, %v396_v60  ;;  %v1567_v2 = vadd.f32 1.0, %v2124_v62  ;;  %2143 = vtanh.f32 %v1190_v48  ;;  %v2890_v6 = vpop.f32.mrf.mxu0  ;;  %687 = vmatmul.mubr.f32.gmra.mxu0 %v199_v57  ;;  %1136 = vmatmul.mubr.f32.gmra.mxu1 %v135_v58  ;;  %v2126_v10 = vpop.eup %2125 }
 0x143   :  { %v2892_v8 = vpop.f32.mrf.mxu1  ;;  %v1883_v11 = vadd.f32 %v1819_v63, %v2722_v5  ;;  %692 = vmatprep.mubr.f32.mxu0 %v2665_v0  ;;  %1141 = vmatprep.mubr.f32.mxu1 %v2665_v0  ;;  %v832_v5 = vadd.f32 %v2864_v19, %v2862_v18  ;;  %v1757_v34 = vsub.f32 %v2126_v10, %v2732_v9  ;;  %v201_v19 = vld [vmem:[#allocation5 + $0x1e8] sm:$0xff] }
 0x144   :  { %2145 = vpow2.f32 %v2038_v3  ;;  %v1199_v13 = vadd.f32 %v2828_v47, %v846_v1  ;;  %v2128_v17 = vpop.eup %2127  ;;  %v402_v20 = vpop.f32.mrf.mxu0  ;;  %v1198_v62 = vadd.f32 %v2838_v14, %v844_v43  ;;  %v850_v63 = vadd.f32 %v2892_v8, %v2890_v6  ;;  %v2490_v6 = vld [vmem:[#allocation2 + $0x28] sm:$0xff]  ;;  %v2492_v43 = vld [vmem:[#allocation2 + $0x38] sm:$0xff] }
 0x145   :  { %2147 = vrcp.f32 %v1567_v2  ;;  %v851_v21 = vpop.f32.mrf.mxu1  ;;  %v2130_v22 = vpop.eup %2129  ;;  %1947 = vst [vmem:[#allocation10 + $0x8] sm:$0xff] %v1883_v11  ;;  %v1820_v23 = vmul.f32 %v2128_v17, %v1756_v12  ;;  %v1194_v39 = vadd.f32 %v2838_v14, %v832_v5  ;;  %v203_v11 = vld [vmem:[#allocation5 + $0x1f8] sm:$0xff] }
 0x146   :  { %v2039_v7 = vmul.f32 -1.442695, %v1199_v13  ;;  %v852_v24 = vadd.f32 %v851_v21, %v402_v20  ;;  %v1568_v25 = vadd.f32 1.0, %v2130_v22  ;;  %2149 = vtanh.f32 %v1192_v4  ;;  %v2903_v27 = vpop.f32.mrf.mxu0  ;;  %693 = vmatmul.mubr.f32.gmra.mxu0 %v200_v15  ;;  %1142 = vmatmul.mubr.f32.gmra.mxu1 %v136_v16  ;;  %v2132_v29 = vpop.eup %2131  ;;  %v139_v12 = vld [vmem:[#allocation2 + $0x1f8] sm:$0xff] }
 0x147   :  { %v2905_v28 = vpop.f32.mrf.mxu1  ;;  %v1884_v31 = vadd.f32 %v2487_v30, %v1820_v23  ;;  %698 = vmatprep.mubr.f32.mxu0 %v2665_v0  ;;  %1147 = vmatprep.mubr.f32.mxu1 %v2665_v0  ;;  %v1758_v51 = vsub.f32 %v2132_v29, %v2489_v55 }
 0x148   :  { %2151 = vpow2.f32 %v2039_v7  ;;  %v1201_v18 = vadd.f32 %v2828_v47, %v852_v24  ;;  %v2134_v33 = vpop.eup %2133  ;;  %v408_v35 = vpop.f32.mrf.mxu0  ;;  %v856_v22 = vadd.f32 %v2905_v28, %v2903_v27 }
 0x149   :  { %2153 = vrcp.f32 %v1568_v25  ;;  %v857_v36 = vpop.f32.mrf.mxu1  ;;  %v2136_v37 = vpop.eup %2135  ;;  %1948 = vst [vmem:[#allocation10 + $0x10] sm:$0xff] %v1884_v31  ;;  %v1821_v38 = vmul.f32 %v2134_v33, %v1757_v34  ;;  %v2491_v31 = vld [vmem:[#allocation2 + $0x30] sm:$0xff] }
 0x14a   :  { %v2040_v40 = vmul.f32 -1.442695, %v1201_v18  ;;  %v858_v9 = vadd.f32 %v857_v36, %v408_v35  ;;  %v1569_v41 = vadd.f32 1.0, %v2136_v37  ;;  %v2915_v44 = vpop.f32.mrf.mxu0  ;;  %699 = vmatmul.mubr.f32.gmra.mxu0 %v201_v19  ;;  %1148 = vmatmul.mubr.f32.gmra.mxu1 %v137_v32  ;;  %v2138_v54 = vpop.eup %2137  ;;  %v1202_v33 = vadd.f32 %v2838_v14, %v856_v22 }
 0x14b   :  { %v2917_v45 = vpop.f32.mrf.mxu1  ;;  %v1885_v48 = vadd.f32 %v2488_v46, %v1821_v38  ;;  %704 = vmatprep.mubr.f32.mxu0 %v2665_v0  ;;  %1153 = vmatprep.mubr.f32.mxu1 %v2665_v0  ;;  %v1759_v8 = vsub.f32 %v2138_v54, %v2490_v6 }
 0x14c   :  { %2155 = vpow2.f32 %v2040_v40  ;;  %v1203_v49 = vadd.f32 %v2828_v47, %v858_v9  ;;  %v414_v52 = vpop.f32.mrf.mxu0  ;;  %v862_v37 = vadd.f32 %v2917_v45, %v2915_v44 }
 0x14d   :  { %2157 = vrcp.f32 %v1569_v41  ;;  %v863_v56 = vpop.f32.mrf.mxu1  ;;  %v2140_v57 = vpop.eup %2139  ;;  %1949 = vst [vmem:[#allocation10 + $0x18] sm:$0xff] %v1885_v48 }
 0x14e   :  { %2159 = vtanh.f32 %v1194_v39  ;;  %v2041_v58 = vmul.f32 -1.442695, %v1203_v49  ;;  %v864_v59 = vadd.f32 %v863_v56, %v414_v52  ;;  %v2142_v60 = vpop.eup %2141  ;;  %v1822_v61 = vmul.f32 %v2140_v57, %v1758_v51  ;;  %v2925_v3 = vpop.f32.mrf.mxu0  ;;  %705 = vmatmul.mubr.f32.gmra.mxu0 %v202_v50  ;;  %1154 = vmatmul.mubr.f32.gmra.mxu1 %v138_v53 }
 0x14f   :  { %2161 = vtanh.f32 %v1196_v42  ;;  %v2927_v1 = vpop.f32.mrf.mxu1  ;;  %v2144_v2 = vpop.eup %2143  ;;  %v1570_v4 = vadd.f32 1.0, %v2142_v60  ;;  %710 = vmatprep.mubr.f32.mxu0 %v2665_v0  ;;  %1159 = vmatprep.mubr.f32.mxu1 %v2665_v0  ;;  %v1200_v0 = vadd.f32 %v2838_v14, %v850_v63  ;;  %v1204_v45 = vadd.f32 %v2838_v14, %v862_v37 }
 0x150   :  { %2163 = vpow2.f32 %v2041_v58  ;;  %v1205_v10 = vadd.f32 %v2828_v47, %v864_v59  ;;  %v1886_v15 = vadd.f32 %v2489_v55, %v1822_v61  ;;  %v420_v16 = vpop.f32.mrf.mxu0  ;;  %v1760_v34 = vsub.f32 %v2144_v2, %v2491_v31  ;;  %v2493_v2 = vld [vmem:[#allocation2 + $0x40] sm:$0xff] }
 0x151   :  { %v2146_v13 = vpop.eup %2145  ;;  %v869_v17 = vpop.f32.mrf.mxu1  ;;  %2165 = vrcp.f32 %v1570_v4  ;;  %v868_v51 = vadd.f32 %v2927_v1, %v2925_v3 }
 0x152   :  { %v2148_v20 = vpop.eup %2147  ;;  %v1571_v21 = vadd.f32 1.0, %v2146_v13  ;;  %v2042_v23 = vmul.f32 -1.442695, %v1205_v10  ;;  %1950 = vst [vmem:[#allocation10 + $0x20] sm:$0xff] %v1886_v15  ;;  %2167 = vtanh.f32 %v1198_v62  ;;  %v870_v7 = vadd.f32 %v869_v17, %v420_v16  ;;  %v2935_v24 = vpop.f32.mrf.mxu0  ;;  %711 = vmatmul.mubr.f32.gmra.mxu0 %v203_v11  ;;  %1160 = vmatmul.mubr.f32.gmra.mxu1 %v139_v12  ;;  %v2494_v13 = vld [vmem:[#allocation2 + $0x48] sm:$0xff] }
 0x153   :  { %v1823_v5 = vmul.f32 %v2148_v20, %v1759_v8  ;;  %v2937_v25 = vpop.f32.mrf.mxu1  ;;  %v2150_v26 = vpop.eup %2149  ;;  %v1206_v1 = vadd.f32 %v2838_v14, %v868_v51 }
 0x154   :  { %2169 = vrcp.f32 %v1571_v21  ;;  %v1207_v27 = vadd.f32 %v2828_v47, %v870_v7  ;;  %v426_v28 = vpop.f32.mrf.mxu0  ;;  %v1761_v46 = vsub.f32 %v2150_v26, %v2492_v43  ;;  %v874_v20 = vadd.f32 %v2937_v25, %v2935_v24  ;;  %v2495_v24 = vld [vmem:[#allocation2 + $0x50] sm:$0xff] }
 0x155   :  { %v2152_v29 = vpop.eup %2151  ;;  %v1887_v30 = vadd.f32 %v2490_v6, %v1823_v5  ;;  %2171 = vpow2.f32 %v2042_v23  ;;  %v875_v18 = vpop.f32.mrf.mxu1 }
 0x156   :  { %v2154_v19 = vpop.eup %2153  ;;  %v1572_v32 = vadd.f32 1.0, %v2152_v29  ;;  %v876_v35 = vadd.f32 %v875_v18, %v426_v28  ;;  %2173 = vtanh.f32 %v1200_v0  ;;  %v2043_v38 = vmul.f32 -1.442695, %v1207_v27  ;;  %v430_v39 = vpop.f32.mrf.mxu0 }
 0x157   :  { %1951 = vst [vmem:[#allocation10 + $0x28] sm:$0xff] %v1887_v30  ;;  %v1824_v36 = vmul.f32 %v2154_v19, %v1760_v34  ;;  %v879_v40 = vpop.f32.mrf.mxu1 }
 0x158   :  { %2175 = vrcp.f32 %v1572_v32  ;;  %v1209_v9 = vadd.f32 %v2828_v47, %v876_v35  ;;  %v432_v48 = vpop.f32.mrf.mxu0  ;;  %v1208_v32 = vadd.f32 %v2838_v14, %v874_v20 }
 0x159   :  { %v2156_v41 = vpop.eup %2155  ;;  %v1888_v42 = vadd.f32 %v2491_v31, %v1824_v36  ;;  %2177 = vpow2.f32 %v2043_v38  ;;  %v881_v49 = vpop.f32.mrf.mxu1  ;;  %v880_v31 = vadd.f32 %v879_v40, %v430_v39 }
 0x15a   :  { %v2158_v50 = vpop.eup %2157  ;;  %v1573_v53 = vadd.f32 1.0, %v2156_v41  ;;  %2179 = vtanh.f32 %v1202_v33  ;;  %v2044_v54 = vmul.f32 -1.442695, %v1209_v9  ;;  %v882_v52 = vadd.f32 %v881_v49, %v432_v48  ;;  %v436_v56 = vpop.f32.mrf.mxu0 }
 0x15b   :  { %v2160_v55 = vpop.eup %2159  ;;  %1952 = vst [vmem:[#allocation10 + $0x30] sm:$0xff] %v1888_v42  ;;  %v1825_v44 = vmul.f32 %v2158_v50, %v1761_v46  ;;  %v885_v57 = vpop.f32.mrf.mxu1  ;;  %v1210_v42 = vadd.f32 %v2838_v14, %v880_v31 }
 0x15c   :  { %v2162_v58 = vpop.eup %2161  ;;  %2181 = vrcp.f32 %v1573_v53  ;;  %v1211_v61 = vadd.f32 %v2828_v47, %v882_v52  ;;  %v438_v62 = vpop.f32.mrf.mxu0  ;;  %v1762_v4 = vsub.f32 %v2160_v55, %v2493_v2  ;;  %v2496_v53 = vld [vmem:[#allocation2 + $0x58] sm:$0xff] }
 0x15d   :  { %v2164_v59 = vpop.eup %2163  ;;  %v1889_v60 = vadd.f32 %v2492_v43, %v1825_v44  ;;  %2183 = vpow2.f32 %v2044_v54  ;;  %v887_v63 = vpop.f32.mrf.mxu1  ;;  %v1763_v3 = vsub.f32 %v2162_v58, %v2494_v13  ;;  %v886_v43 = vadd.f32 %v885_v57, %v436_v56 }
 0x15e   :  { %v1574_v10 = vadd.f32 1.0, %v2164_v59  ;;  %v888_v11 = vadd.f32 %v887_v63, %v438_v62  ;;  %v2166_v12 = vpop.eup %2165  ;;  %2185 = vtanh.f32 %v1204_v45  ;;  %v2045_v15 = vmul.f32 -1.442695, %v1211_v61  ;;  %v442_v6 = vpop.f32.mrf.mxu0 }
 0x15f   :  { %1953 = vst [vmem:[#allocation10 + $0x38] sm:$0xff] %v1889_v60  ;;  %v891_v8 = vpop.f32.mrf.mxu1  ;;  %v2168_v16 = vpop.eup %2167  ;;  %v1826_v17 = vmul.f32 %v2166_v12, %v1762_v4  ;;  %v1212_v57 = vadd.f32 %v2838_v14, %v886_v43 }
 0x160   :  { %2187 = vrcp.f32 %v1574_v10  ;;  %v1213_v21 = vadd.f32 %v2828_v47, %v888_v11  ;;  %v444_v23 = vpop.f32.mrf.mxu0  ;;  %v1764_v25 = vsub.f32 %v2168_v16, %v2495_v24  ;;  %v892_v61 = vadd.f32 %v891_v8, %v442_v6  ;;  %v2497_v10 = vld [vmem:[#allocation2 + $0x60] sm:$0xff] }
 0x161   :  { %v2170_v22 = vpop.eup %2169  ;;  %2189 = vpow2.f32 %v2045_v15  ;;  %v893_v5 = vpop.f32.mrf.mxu1  ;;  %v1890_v7 = vadd.f32 %v2493_v2, %v1826_v17 }
 0x162   :  { %v2172_v0 = vpop.eup %2171  ;;  %v1827_v26 = vmul.f32 %v2170_v22, %v1763_v3  ;;  %v2046_v29 = vmul.f32 -1.442695, %v1213_v21  ;;  %2191 = vtanh.f32 %v1206_v1  ;;  %v894_v34 = vadd.f32 %v893_v5, %v444_v23  ;;  %v448_v27 = vpop.f32.mrf.mxu0 }
 0x163   :  { %v1575_v30 = vadd.f32 1.0, %v2172_v0  ;;  %v897_v28 = vpop.f32.mrf.mxu1  ;;  %v2174_v18 = vpop.eup %2173  ;;  %1954 = vst [vmem:[#allocation10 + $0x40] sm:$0xff] %v1890_v7  ;;  %v1214_v8 = vadd.f32 %v2838_v14, %v892_v61 }
 0x164   :  { %v1891_v19 = vadd.f32 %v2494_v13, %v1827_v26  ;;  %2193 = vpow2.f32 %v2046_v29  ;;  %v1215_v35 = vadd.f32 %v2828_v47, %v894_v34  ;;  %v450_v36 = vpop.f32.mrf.mxu0  ;;  %v1765_v54 = vsub.f32 %v2174_v18, %v2496_v53  ;;  %v2498_v29 = vld [vmem:[#allocation2 + $0x68] sm:$0xff] }
 0x165   :  { %v2176_v33 = vpop.eup %2175  ;;  %2195 = vrcp.f32 %v1575_v30  ;;  %v899_v37 = vpop.f32.mrf.mxu1  ;;  %v898_v17 = vadd.f32 %v897_v28, %v448_v27 }
 0x166   :  { %v2178_v38 = vpop.eup %2177  ;;  %1955 = vst [vmem:[#allocation10 + $0x48] sm:$0xff] %v1891_v19  ;;  %v1828_v39 = vmul.f32 %v2176_v33, %v1764_v25  ;;  %v900_v40 = vadd.f32 %v899_v37, %v450_v36  ;;  %v2047_v46 = vmul.f32 -1.442695, %v1215_v35  ;;  %v454_v48 = vpop.f32.mrf.mxu0  ;;  %2197 = vtanh.f32 %v1208_v32 }
 0x167   :  { %v2180_v9 = vpop.eup %2179  ;;  %v1576_v41 = vadd.f32 1.0, %v2178_v38  ;;  %v903_v49 = vpop.f32.mrf.mxu1  ;;  %v1216_v18 = vadd.f32 %v2838_v14, %v898_v17  ;;  %v2501_v17 = vld [vmem:[#allocation2 + $0x80] sm:$0xff] }
 0x168   :  { %v1892_v50 = vadd.f32 %v2495_v24, %v1828_v39  ;;  %v1217_v55 = vadd.f32 %v2828_v47, %v900_v40  ;;  %v456_v45 = vpop.f32.mrf.mxu0  ;;  %v1766_v11 = vsub.f32 %v2180_v9, %v2497_v10  ;;  %v904_v32 = vadd.f32 %v903_v49, %v454_v48  ;;  %v2499_v39 = vld [vmem:[#allocation2 + $0x70] sm:$0xff] }
 0x169   :  { %v2182_v44 = vpop.eup %2181  ;;  %2199 = vrcp.f32 %v1576_v41  ;;  %v905_v51 = vpop.f32.mrf.mxu1 }
 0x16a   :  { %v2184_v52 = vpop.eup %2183  ;;  %1956 = vst [vmem:[#allocation10 + $0x50] sm:$0xff] %v1892_v50  ;;  %v1829_v58 = vmul.f32 %v2182_v44, %v1765_v54  ;;  %2201 = vpow2.f32 %v2047_v46  ;;  %v2048_v59 = vmul.f32 -1.442695, %v1217_v55  ;;  %v906_v60 = vadd.f32 %v905_v51, %v456_v45  ;;  %v460_v62 = vpop.f32.mrf.mxu0 }
 0x16b   :  { %v1577_v56 = vadd.f32 1.0, %v2184_v52  ;;  %2203 = vtanh.f32 %v1210_v42  ;;  %v909_v63 = vpop.f32.mrf.mxu1  ;;  %v2186_v2 = vpop.eup %2185  ;;  %v1218_v48 = vadd.f32 %v2838_v14, %v904_v32 }
 0x16c   :  { %v1893_v4 = vadd.f32 %v2496_v53, %v1829_v58  ;;  %2205 = vpow2.f32 %v2048_v59  ;;  %v1219_v12 = vadd.f32 %v2828_v47, %v906_v60  ;;  %v462_v3 = vpop.f32.mrf.mxu0  ;;  %v1767_v30 = vsub.f32 %v2186_v2, %v2498_v29  ;;  %v2500_v58 = vld [vmem:[#allocation2 + $0x78] sm:$0xff] }
 0x16d   :  { %v2188_v13 = vpop.eup %2187  ;;  %2207 = vrcp.f32 %v1577_v56  ;;  %v911_v1 = vpop.f32.mrf.mxu1  ;;  %v910_v49 = vadd.f32 %v909_v63, %v460_v62 }
 0x16e   :  { %v2190_v15 = vpop.eup %2189  ;;  %1957 = vst [vmem:[#allocation10 + $0x58] sm:$0xff] %v1893_v4  ;;  %v1830_v16 = vmul.f32 %v2188_v13, %v1766_v11  ;;  %v2049_v20 = vmul.f32 -1.442695, %v1219_v12  ;;  %v912_v21 = vadd.f32 %v911_v1, %v462_v3  ;;  %2209 = vtanh.f32 %v1212_v57  ;;  %v2959_v22 = vpop.f32.mrf.mxu0 }
 0x16f   :  { %v1578_v6 = vadd.f32 1.0, %v2190_v15  ;;  %v2961_v23 = vpop.f32.mrf.mxu1  ;;  %v2192_v5 = vpop.eup %2191  ;;  %v1220_v63 = vadd.f32 %v2838_v14, %v910_v49 }
 0x170   :  { %v1894_v0 = vadd.f32 %v2497_v10, %v1830_v16  ;;  %2211 = vpow2.f32 %v2049_v20  ;;  %v1221_v7 = vadd.f32 %v2828_v47, %v912_v21  ;;  %v468_v31 = vpop.f32.mrf.mxu0  ;;  %v1768_v40 = vsub.f32 %v2192_v5, %v2499_v39 }
 0x171   :  { %v2194_v26 = vpop.eup %2193  ;;  %2213 = vrcp.f32 %v1578_v6  ;;  %v917_v34 = vpop.f32.mrf.mxu1  ;;  %v916_v3 = vadd.f32 %v2961_v23, %v2959_v22 }
 0x172   :  { %v2196_v27 = vpop.eup %2195  ;;  %1958 = vst [vmem:[#allocation10 + $0x60] sm:$0xff] %v1894_v0  ;;  %v1579_v28 = vadd.f32 1.0, %v2194_v26  ;;  %v2050_v19 = vmul.f32 -1.442695, %v1221_v7  ;;  %v918_v24 = vadd.f32 %v917_v34, %v468_v31  ;;  %2215 = vtanh.f32 %v1214_v8  ;;  %v472_v33 = vpop.f32.mrf.mxu0  ;;  %v2502_v31 = vld [vmem:[#allocation2 + $0x88] sm:$0xff] }
 0x173   :  { %v1831_v25 = vmul.f32 %v2196_v27, %v1767_v30  ;;  %v921_v35 = vpop.f32.mrf.mxu1  ;;  %v2198_v37 = vpop.eup %2197  ;;  %v1222_v27 = vadd.f32 %v2838_v14, %v916_v3 }
 0x174   :  { %2217 = vrcp.f32 %v1579_v28  ;;  %v1223_v36 = vadd.f32 %v2828_v47, %v918_v24  ;;  %v474_v9 = vpop.f32.mrf.mxu0  ;;  %v1769_v59 = vsub.f32 %v2198_v37, %v2500_v58  ;;  %v922_v26 = vadd.f32 %v921_v35, %v472_v33 }
 0x175   :  { %v1895_v38 = vadd.f32 %v2498_v29, %v1831_v25  ;;  %2219 = vpow2.f32 %v2050_v19  ;;  %v923_v41 = vpop.f32.mrf.mxu1 }
 0x176   :  { %v2200_v42 = vpop.eup %2199  ;;  %2221 = vtanh.f32 %v1216_v18  ;;  %v2051_v43 = vmul.f32 -1.442695, %v1223_v36  ;;  %v924_v53 = vadd.f32 %v923_v41, %v474_v9  ;;  %v478_v54 = vpop.f32.mrf.mxu0 }
 0x177   :  { %v2202_v46 = vpop.eup %2201  ;;  %1959 = vst [vmem:[#allocation10 + $0x68] sm:$0xff] %v1895_v38  ;;  %v1832_v50 = vmul.f32 %v2200_v42, %v1768_v40  ;;  %v927_v55 = vpop.f32.mrf.mxu1  ;;  %v1224_v38 = vadd.f32 %v2838_v14, %v922_v26 }
 0x178   :  { %v2204_v44 = vpop.eup %2203  ;;  %v1580_v45 = vadd.f32 1.0, %v2202_v46  ;;  %2223 = vpow2.f32 %v2051_v43  ;;  %v1225_v60 = vadd.f32 %v2828_v47, %v924_v53  ;;  %v480_v56 = vpop.f32.mrf.mxu0 }
 0x179   :  { %v2206_v51 = vpop.eup %2205  ;;  %v1896_v52 = vadd.f32 %v2499_v39, %v1832_v50  ;;  %v929_v57 = vpop.f32.mrf.mxu1  ;;  %v1770_v20 = vsub.f32 %v2204_v44, %v2501_v17  ;;  %v928_v39 = vadd.f32 %v927_v55, %v478_v54  ;;  %v2503_v50 = vld [vmem:[#allocation2 + $0x90] sm:$0xff]  ;;  %v2504_v54 = vld [vmem:[#allocation2 + $0x98] sm:$0xff] }
 0x17a   :  { %v2208_v61 = vpop.eup %2207  ;;  %2225 = vrcp.f32 %v1580_v45  ;;  %v1581_v2 = vadd.f32 1.0, %v2206_v51  ;;  %v930_v4 = vadd.f32 %v929_v57, %v480_v56  ;;  %v2052_v10 = vmul.f32 -1.442695, %v1225_v60  ;;  %v2969_v11 = vpop.f32.mrf.mxu0 }
 0x17b   :  { %1960 = vst [vmem:[#allocation10 + $0x70] sm:$0xff] %v1896_v52  ;;  %v1833_v62 = vmul.f32 %v2208_v61, %v1769_v59  ;;  %2227 = vtanh.f32 %v1218_v48  ;;  %v2971_v12 = vpop.f32.mrf.mxu1  ;;  %v2210_v13 = vpop.eup %2209 }
 0x17c   :  { %2229 = vrcp.f32 %v1581_v2  ;;  %v1227_v1 = vadd.f32 %v2828_v47, %v930_v4  ;;  %v486_v21 = vpop.f32.mrf.mxu0  ;;  %v1771_v34 = vsub.f32 %v2210_v13, %v2502_v31  ;;  %v934_v61 = vadd.f32 %v2971_v12, %v2969_v11 }
 0x17d   :  { %v2212_v15 = vpop.eup %2211  ;;  %v1897_v16 = vadd.f32 %v2500_v58, %v1833_v62  ;;  %2231 = vpow2.f32 %v2052_v10  ;;  %v935_v6 = vpop.f32.mrf.mxu1  ;;  %v1226_v58 = vadd.f32 %v2838_v14, %v928_v39 }
 0x17e   :  { %v2214_v8 = vpop.eup %2213  ;;  %v1582_v5 = vadd.f32 1.0, %v2212_v15  ;;  %v2053_v0 = vmul.f32 -1.442695, %v1227_v1  ;;  %2233 = vtanh.f32 %v1220_v63  ;;  %v936_v29 = vadd.f32 %v935_v6, %v486_v21  ;;  %v2976_v30 = vpop.f32.mrf.mxu0 }
 0x17f   :  { %1961 = vst [vmem:[#allocation10 + $0x78] sm:$0xff] %v1897_v16  ;;  %v1834_v7 = vmul.f32 %v2214_v8, %v1770_v20  ;;  %v2978_v22 = vpop.f32.mrf.mxu1  ;;  %v2216_v23 = vpop.eup %2215  ;;  %v2505_v8 = vld [vmem:[#allocation2 + $0xa0] sm:$0xff]  ;;  %v1228_v12 = vadd.f32 %v2838_v14, %v934_v61 }
 0x180   :  { %2235 = vrcp.f32 %v1582_v5  ;;  %v1229_v19 = vadd.f32 %v2828_v47, %v936_v29  ;;  %v492_v24 = vpop.f32.mrf.mxu0  ;;  %v1772_v48 = vsub.f32 %v2216_v23, %v2503_v50 }
 0x181   :  { %v2218_v28 = vpop.eup %2217  ;;  %v1898_v18 = vadd.f32 %v2501_v17, %v1834_v7  ;;  %2237 = vpow2.f32 %v2053_v0  ;;  %v941_v25 = vpop.f32.mrf.mxu1  ;;  %v940_v0 = vadd.f32 %v2978_v22, %v2976_v30  ;;  %v2506_v30 = vld [vmem:[#allocation2 + $0xa8] sm:$0xff] }
 0x182   :  { %v2220_v32 = vpop.eup %2219  ;;  %v1835_v33 = vmul.f32 %v2218_v28, %v1771_v34  ;;  %v942_v35 = vadd.f32 %v941_v25, %v492_v24  ;;  %v2054_v40 = vmul.f32 -1.442695, %v1229_v19  ;;  %v496_v9 = vpop.f32.mrf.mxu0  ;;  %2239 = vtanh.f32 %v1222_v27 }
 0x183   :  { %v2222_v36 = vpop.eup %2221  ;;  %1962 = vst [vmem:[#allocation10 + $0x80] sm:$0xff] %v1898_v18  ;;  %v1583_v37 = vadd.f32 1.0, %v2220_v32  ;;  %v945_v41 = vpop.f32.mrf.mxu1 }
 0x184   :  { %v1899_v42 = vadd.f32 %v2502_v31, %v1835_v33  ;;  %v1231_v43 = vadd.f32 %v2828_v47, %v942_v35  ;;  %v498_v49 = vpop.f32.mrf.mxu0  ;;  %v1773_v55 = vsub.f32 %v2222_v36, %v2504_v54  ;;  %v946_v28 = vadd.f32 %v945_v41, %v496_v9 }
 0x185   :  { %v2224_v46 = vpop.eup %2223  ;;  %2241 = vrcp.f32 %v1583_v37  ;;  %v947_v53 = vpop.f32.mrf.mxu1  ;;  %v1230_v35 = vadd.f32 %v2838_v14, %v940_v0 }
 0x186   :  { %1963 = vst [vmem:[#allocation10 + $0x88] sm:$0xff] %v1899_v42  ;;  %v1584_v44 = vadd.f32 1.0, %v2224_v46  ;;  %2243 = vpow2.f32 %v2054_v40  ;;  %v2055_v45 = vmul.f32 -1.442695, %v1231_v43  ;;  %v948_v51 = vadd.f32 %v947_v53, %v498_v49  ;;  %v502_v59 = vpop.f32.mrf.mxu0  ;;  %v2507_v49 = vld [vmem:[#allocation2 + $0xb0] sm:$0xff] }
 0x187   :  { %v2226_v52 = vpop.eup %2225  ;;  %2245 = vtanh.f32 %v1224_v38  ;;  %v951_v60 = vpop.f32.mrf.mxu1  ;;  %v1232_v42 = vadd.f32 %v2838_v14, %v946_v28 }
 0x188   :  { %v2228_v56 = vpop.eup %2227  ;;  %v1836_v57 = vmul.f32 %v2226_v52, %v1772_v48  ;;  %2247 = vrcp.f32 %v1584_v44  ;;  %v1233_v2 = vadd.f32 %v2828_v47, %v948_v51  ;;  %v504_v62 = vpop.f32.mrf.mxu0  ;;  %v952_v43 = vadd.f32 %v951_v60, %v502_v59 }
 0x189   :  { %v2230_v4 = vpop.eup %2229  ;;  %2249 = vpow2.f32 %v2055_v45  ;;  %v953_v63 = vpop.f32.mrf.mxu1  ;;  %v1774_v11 = vsub.f32 %v2228_v56, %v2505_v8 }
 0x18a   :  { %v2232_v10 = vpop.eup %2231  ;;  %v1900_v13 = vadd.f32 %v2503_v50, %v1836_v57  ;;  %v1837_v3 = vmul.f32 %v2230_v4, %v1773_v55  ;;  %v2056_v1 = vmul.f32 -1.442695, %v1233_v2  ;;  %2251 = vtanh.f32 %v1226_v58  ;;  %v508_v17 = vpop.f32.mrf.mxu0 }
 0x18b   :  { %v1585_v15 = vadd.f32 1.0, %v2232_v10  ;;  %v954_v16 = vadd.f32 %v953_v63, %v504_v62  ;;  %v957_v20 = vpop.f32.mrf.mxu1  ;;  %v2234_v21 = vpop.eup %2233  ;;  %v1234_v60 = vadd.f32 %v2838_v14, %v952_v43 }
 0x18c   :  { %1964 = vst [vmem:[#allocation10 + $0x90] sm:$0xff] %v1900_v13  ;;  %v1901_v6 = vadd.f32 %v2504_v54, %v1837_v3  ;;  %2253 = vpow2.f32 %v2056_v1  ;;  %v510_v26 = vpop.f32.mrf.mxu0  ;;  %v1775_v22 = vsub.f32 %v2234_v21, %v2506_v30  ;;  %v958_v57 = vadd.f32 %v957_v20, %v508_v17  ;;  %v2508_v3 = vld [vmem:[#allocation2 + $0xb8] sm:$0xff] }
 0x18d   :  { %v2236_v5 = vpop.eup %2235  ;;  %2255 = vrcp.f32 %v1585_v15  ;;  %v1235_v7 = vadd.f32 %v2828_v47, %v954_v16  ;;  %v959_v29 = vpop.f32.mrf.mxu1 }
 0x18e   :  { %v2238_v23 = vpop.eup %2237  ;;  %1965 = vst [vmem:[#allocation10 + $0x98] sm:$0xff] %v1901_v6  ;;  %v1838_v31 = vmul.f32 %v2236_v5, %v1774_v11  ;;  %v960_v34 = vadd.f32 %v959_v29, %v510_v26  ;;  %v2992_v19 = vpop.f32.mrf.mxu0  ;;  %2257 = vtanh.f32 %v1228_v12  ;;  %v1236_v6 = vadd.f32 %v2838_v14, %v958_v57 }
 0x18f   :  { %v1586_v27 = vadd.f32 1.0, %v2238_v23  ;;  %v2057_v18 = vmul.f32 -1.442695, %v1235_v7  ;;  %v963_v24 = vpop.f32.mrf.mxu1  ;;  %v2240_v33 = vpop.eup %2239 }
 0x190   :  { %v1902_v25 = vadd.f32 %v2505_v8, %v1838_v31  ;;  %v1237_v32 = vadd.f32 %v2828_v47, %v960_v34  ;;  %v516_v36 = vpop.f32.mrf.mxu0  ;;  %v1776_v53 = vsub.f32 %v2240_v33, %v2507_v49  ;;  %v964_v12 = vadd.f32 %v963_v24, %v2992_v19  ;;  %v2509_v31 = vld [vmem:[#allocation2 + $0xc0] sm:$0xff] }
 0x191   :  { %2259 = vrcp.f32 %v1586_v27  ;;  %v965_v37 = vpop.f32.mrf.mxu1 }
 0x192   :  { %v2242_v38 = vpop.eup %2241  ;;  %1966 = vst [vmem:[#allocation10 + $0xa0] sm:$0xff] %v1902_v25  ;;  %2261 = vpow2.f32 %v2057_v18  ;;  %v2058_v39 = vmul.f32 -1.442695, %v1237_v32  ;;  %v966_v40 = vadd.f32 %v965_v37, %v516_v36  ;;  %v520_v46 = vpop.f32.mrf.mxu0  ;;  %v1238_v19 = vadd.f32 %v2838_v14, %v964_v12 }
 0x193   :  { %v2244_v9 = vpop.eup %2243  ;;  %v1839_v41 = vmul.f32 %v2242_v38, %v1775_v22  ;;  %v969_v50 = vpop.f32.mrf.mxu1 }
 0x194   :  { %v2246_v48 = vpop.eup %2245  ;;  %v1587_v44 = vadd.f32 1.0, %v2244_v9  ;;  %2263 = vpow2.f32 %v2058_v39  ;;  %v1239_v45 = vadd.f32 %v2828_v47, %v966_v40  ;;  %v522_v54 = vpop.f32.mrf.mxu0  ;;  %v970_v24 = vadd.f32 %v969_v50, %v520_v46 }
 0x195   :  { %v2248_v51 = vpop.eup %2247  ;;  %v1903_v52 = vadd.f32 %v2506_v30, %v1839_v41  ;;  %2265 = vtanh.f32 %v1230_v35  ;;  %v971_v55 = vpop.f32.mrf.mxu1  ;;  %v1777_v1 = vsub.f32 %v2246_v48, %v2508_v3 }
 0x196   :  { %v2250_v58 = vpop.eup %2249  ;;  %v1840_v56 = vmul.f32 %v2248_v51, %v1776_v53  ;;  %2267 = vrcp.f32 %v1587_v44  ;;  %v2059_v61 = vmul.f32 -1.442695, %v1239_v45  ;;  %v972_v2 = vadd.f32 %v971_v55, %v522_v54  ;;  %v2999_v4 = vpop.f32.mrf.mxu0 }
 0x197   :  { %1967 = vst [vmem:[#allocation10 + $0xa8] sm:$0xff] %v1903_v52  ;;  %v1588_v59 = vadd.f32 1.0, %v2250_v58  ;;  %2269 = vtanh.f32 %v1232_v42  ;;  %v3001_v62 = vpop.f32.mrf.mxu1  ;;  %v2252_v63 = vpop.eup %2251  ;;  %v2510_v42 = vld [vmem:[#allocation2 + $0xc8] sm:$0xff]  ;;  %v1240_v46 = vadd.f32 %v2838_v14, %v970_v24 }
 0x198   :  { %v1904_v10 = vadd.f32 %v2507_v49, %v1840_v56  ;;  %2271 = vpow2.f32 %v2059_v61  ;;  %v1241_v15 = vadd.f32 %v2828_v47, %v972_v2  ;;  %v528_v16 = vpop.f32.mrf.mxu0  ;;  %v1778_v34 = vsub.f32 %v2252_v63, %v2509_v31  ;;  %v2511_v56 = vld [vmem:[#allocation2 + $0xd0] sm:$0xff] }
 0x199   :  { %v2254_v13 = vpop.eup %2253  ;;  %2273 = vrcp.f32 %v1588_v59  ;;  %v977_v17 = vpop.f32.mrf.mxu1  ;;  %v976_v54 = vadd.f32 %v3001_v62, %v2999_v4  ;;  %v2512_v62 = vld [vmem:[#allocation2 + $0xd8] sm:$0xff] }
 0x19a   :  { %v2256_v20 = vpop.eup %2255  ;;  %1968 = vst [vmem:[#allocation10 + $0xb0] sm:$0xff] %v1904_v10  ;;  %v1589_v21 = vadd.f32 1.0, %v2254_v13  ;;  %v978_v8 = vadd.f32 %v977_v17, %v528_v16  ;;  %2275 = vtanh.f32 %v1234_v60  ;;  %v2060_v5 = vmul.f32 -1.442695, %v1241_v15  ;;  %v532_v0 = vpop.f32.mrf.mxu0 }
 0x19b   :  { %v1841_v11 = vmul.f32 %v2256_v20, %v1777_v1  ;;  %v981_v7 = vpop.f32.mrf.mxu1  ;;  %v2258_v29 = vpop.eup %2257  ;;  %v1242_v20 = vadd.f32 %v2838_v14, %v976_v54 }
 0x19c   :  { %2277 = vrcp.f32 %v1589_v21  ;;  %v1243_v26 = vadd.f32 %v2828_v47, %v978_v8  ;;  %v534_v27 = vpop.f32.mrf.mxu0  ;;  %v1779_v43 = vsub.f32 %v2258_v29, %v2510_v42 }
 0x19d   :  { %v1905_v23 = vadd.f32 %v2508_v3, %v1841_v11  ;;  %2279 = vpow2.f32 %v2060_v5  ;;  %v983_v28 = vpop.f32.mrf.mxu1  ;;  %v982_v3 = vadd.f32 %v981_v7, %v532_v0 }
 0x19e   :  { %v2260_v18 = vpop.eup %2259  ;;  %2281 = vtanh.f32 %v1236_v6  ;;  %v2061_v25 = vmul.f32 -1.442695, %v1243_v26  ;;  %v984_v30 = vadd.f32 %v983_v28, %v534_v27  ;;  %v538_v22 = vpop.f32.mrf.mxu0 }
 0x19f   :  { %v2262_v32 = vpop.eup %2261  ;;  %1969 = vst [vmem:[#allocation10 + $0xb8] sm:$0xff] %v1905_v23  ;;  %v1842_v33 = vmul.f32 %v2260_v18, %v1778_v34  ;;  %v987_v35 = vpop.f32.mrf.mxu1  ;;  %v1244_v23 = vadd.f32 %v2838_v14, %v982_v3 }
 0x1a0   :  { %v1590_v36 = vadd.f32 1.0, %v2262_v32  ;;  %2283 = vpow2.f32 %v2061_v25  ;;  %v1245_v39 = vadd.f32 %v2828_v47, %v984_v30  ;;  %v540_v40 = vpop.f32.mrf.mxu0 }
 0x1a1   :  { %v2264_v37 = vpop.eup %2263  ;;  %v1906_v38 = vadd.f32 %v2509_v31, %v1842_v33  ;;  %v989_v9 = vpop.f32.mrf.mxu1  ;;  %v988_v31 = vadd.f32 %v987_v35, %v538_v22  ;;  %v2513_v33 = vld [vmem:[#allocation2 + $0xe0] sm:$0xff]  ;;  %v2514_v22 = vld [vmem:[#allocation2 + $0xe8] sm:$0xff] }
 0x1a2   :  { %v2266_v41 = vpop.eup %2265  ;;  %2285 = vrcp.f32 %v1590_v36  ;;  %v1591_v48 = vadd.f32 1.0, %v2264_v37  ;;  %v990_v49 = vadd.f32 %v989_v9, %v540_v40  ;;  %v2062_v50 = vmul.f32 -1.442695, %v1245_v39  ;;  %v3010_v44 = vpop.f32.mrf.mxu0 }
 0x1a3   :  { %v2268_v53 = vpop.eup %2267  ;;  %1970 = vst [vmem:[#allocation10 + $0xc0] sm:$0xff] %v1906_v38  ;;  %2287 = vtanh.f32 %v1238_v19  ;;  %v3012_v45 = vpop.f32.mrf.mxu1  ;;  %v1780_v57 = vsub.f32 %v2266_v41, %v2511_v56  ;;  %v1246_v40 = vadd.f32 %v2838_v14, %v988_v31 }
 0x1a4   :  { %v2270_v51 = vpop.eup %2269  ;;  %v1843_v52 = vmul.f32 %v2268_v53, %v1779_v43  ;;  %2289 = vrcp.f32 %v1591_v48  ;;  %v1247_v55 = vadd.f32 %v2828_v47, %v990_v49  ;;  %v546_v61 = vpop.f32.mrf.mxu0  ;;  %v994_v48 = vadd.f32 %v3012_v45, %v3010_v44 }
 0x1a5   :  { %v2272_v58 = vpop.eup %2271  ;;  %2291 = vpow2.f32 %v2062_v50  ;;  %v995_v59 = vpop.f32.mrf.mxu1  ;;  %v1781_v17 = vsub.f32 %v2270_v51, %v2512_v62 }
 0x1a6   :  { %v2274_v60 = vpop.eup %2273  ;;  %v1907_v2 = vadd.f32 %v2510_v42, %v1843_v52  ;;  %v1592_v63 = vadd.f32 1.0, %v2272_v58  ;;  %v2063_v10 = vmul.f32 -1.442695, %v1247_v55  ;;  %2293 = vtanh.f32 %v1240_v46  ;;  %v3017_v15 = vpop.f32.mrf.mxu0 }
 0x1a7   :  { %v1844_v13 = vmul.f32 %v2274_v60, %v1780_v57  ;;  %v996_v1 = vadd.f32 %v995_v59, %v546_v61  ;;  %v3019_v16 = vpop.f32.mrf.mxu1  ;;  %v2276_v4 = vpop.eup %2275  ;;  %v1248_v45 = vadd.f32 %v2838_v14, %v994_v48 }
 0x1a8   :  { %1971 = vst [vmem:[#allocation10 + $0xc8] sm:$0xff] %v1907_v2  ;;  %2295 = vrcp.f32 %v1592_v63  ;;  %v552_v11 = vpop.f32.mrf.mxu0  ;;  %v1782_v19 = vsub.f32 %v2276_v4, %v2513_v33  ;;  %v2515_v2 = vld [vmem:[#allocation2 + $0xf0] sm:$0xff] }
 0x1a9   :  { %v2278_v21 = vpop.eup %2277  ;;  %v1908_v6 = vadd.f32 %v2511_v56, %v1844_v13  ;;  %2297 = vpow2.f32 %v2063_v10  ;;  %v1249_v8 = vadd.f32 %v2828_v47, %v996_v1  ;;  %v1001_v12 = vpop.f32.mrf.mxu1  ;;  %v1000_v10 = vadd.f32 %v3019_v16, %v3017_v15  ;;  %v2516_v15 = vld [vmem:[#allocation2 + $0xf8] sm:$0xff] }
 0x1aa   :  { %v2280_v5 = vpop.eup %2279  ;;  %v1845_v0 = vmul.f32 %v2278_v21, %v1781_v17  ;;  %v1002_v7 = vadd.f32 %v1001_v12, %v552_v11  ;;  %v556_v27 = vpop.f32.mrf.mxu0  ;;  %2299 = vtanh.f32 %v1242_v20 }
 0x1ab   :  { %v2282_v26 = vpop.eup %2281  ;;  %1972 = vst [vmem:[#allocation10 + $0xd0] sm:$0xff] %v1908_v6  ;;  %v1593_v29 = vadd.f32 1.0, %v2280_v5  ;;  %v2064_v34 = vmul.f32 -1.442695, %v1249_v8  ;;  %v1005_v28 = vpop.f32.mrf.mxu1 }
 0x1ac   :  { %v1909_v18 = vadd.f32 %v2512_v62, %v1845_v0  ;;  %v1251_v25 = vadd.f32 %v2828_v47, %v1002_v7  ;;  %v558_v24 = vpop.f32.mrf.mxu0  ;;  %v1783_v35 = vsub.f32 %v2282_v26, %v2514_v22  ;;  %v1006_v21 = vadd.f32 %v1005_v28, %v556_v27 }
 0x1ad   :  { %v2284_v32 = vpop.eup %2283  ;;  %2301 = vrcp.f32 %v1593_v29  ;;  %v1007_v30 = vpop.f32.mrf.mxu1  ;;  %v1250_v7 = vadd.f32 %v2838_v14, %v1000_v10 }
 0x1ae   :  { %1973 = vst [vmem:[#allocation10 + $0xd8] sm:$0xff] %v1909_v18  ;;  %v1594_v36 = vadd.f32 1.0, %v2284_v32  ;;  %2303 = vpow2.f32 %v2064_v34  ;;  %v2065_v37 = vmul.f32 -1.442695, %v1251_v25  ;;  %v1008_v38 = vadd.f32 %v1007_v30, %v558_v24  ;;  %v562_v9 = vpop.f32.mrf.mxu0  ;;  %v2517_v24 = vld [vmem:[#allocation2 + $0x100] sm:$0xff] }
 0x1af   :  { %v2286_v39 = vpop.eup %2285  ;;  %2305 = vtanh.f32 %v1244_v23  ;;  %v1011_v41 = vpop.f32.mrf.mxu1  ;;  %v1252_v18 = vadd.f32 %v2838_v14, %v1006_v21 }
 0x1b0   :  { %v2288_v42 = vpop.eup %2287  ;;  %v1846_v43 = vmul.f32 %v2286_v39, %v1782_v19  ;;  %2307 = vrcp.f32 %v1594_v36  ;;  %v1253_v49 = vadd.f32 %v2828_v47, %v1008_v38  ;;  %v564_v46 = vpop.f32.mrf.mxu0  ;;  %v1012_v25 = vadd.f32 %v1011_v41, %v562_v9 }
 0x1b1   :  { %v2290_v53 = vpop.eup %2289  ;;  %2309 = vpow2.f32 %v2065_v37  ;;  %v1013_v50 = vpop.f32.mrf.mxu1  ;;  %v1784_v44 = vsub.f32 %v2288_v42, %v2515_v2 }
 0x1b2   :  { %v2292_v51 = vpop.eup %2291  ;;  %v1910_v52 = vadd.f32 %v2513_v33, %v1846_v43  ;;  %v1847_v54 = vmul.f32 %v2290_v53, %v1783_v35  ;;  %v2066_v55 = vmul.f32 -1.442695, %v1253_v49  ;;  %2311 = vtanh.f32 %v1246_v40  ;;  %v568_v57 = vpop.f32.mrf.mxu0 }
 0x1b3   :  { %v1595_v58 = vadd.f32 1.0, %v2292_v51  ;;  %v1014_v56 = vadd.f32 %v1013_v50, %v564_v46  ;;  %v1017_v61 = vpop.f32.mrf.mxu1  ;;  %v2294_v59 = vpop.eup %2293  ;;  %v1254_v41 = vadd.f32 %v2838_v14, %v1012_v25 }
 0x1b4   :  { %1974 = vst [vmem:[#allocation10 + $0xe0] sm:$0xff] %v1910_v52  ;;  %v1911_v60 = vadd.f32 %v2514_v22, %v1847_v54  ;;  %2313 = vpow2.f32 %v2066_v55  ;;  %v570_v3 = vpop.f32.mrf.mxu0  ;;  %v1785_v16 = vsub.f32 %v2294_v59, %v2516_v15  ;;  %v1018_v43 = vadd.f32 %v1017_v61, %v568_v57  ;;  %v2518_v54 = vld [vmem:[#allocation2 + $0x108] sm:$0xff] }
 0x1b5   :  { %v2296_v63 = vpop.eup %2295  ;;  %2315 = vrcp.f32 %v1595_v58  ;;  %v1255_v13 = vadd.f32 %v2828_v47, %v1014_v56  ;;  %v1019_v1 = vpop.f32.mrf.mxu1 }
 0x1b6   :  { %v2298_v4 = vpop.eup %2297  ;;  %1975 = vst [vmem:[#allocation10 + $0xe8] sm:$0xff] %v1911_v60  ;;  %v1848_v62 = vmul.f32 %v2296_v63, %v1784_v44  ;;  %v1020_v17 = vadd.f32 %v1019_v1, %v570_v3  ;;  %v3033_v8 = vpop.f32.mrf.mxu0  ;;  %2317 = vtanh.f32 %v1248_v45  ;;  %v1256_v60 = vadd.f32 %v2838_v14, %v1018_v43 }
 0x1b7   :  { %v1596_v20 = vadd.f32 1.0, %v2298_v4  ;;  %v2067_v6 = vmul.f32 -1.442695, %v1255_v13  ;;  %v1023_v11 = vpop.f32.mrf.mxu1  ;;  %v2300_v0 = vpop.eup %2299 }
 0x1b8   :  { %v1912_v12 = vadd.f32 %v2515_v2, %v1848_v62  ;;  %v1257_v5 = vadd.f32 %v2828_v47, %v1020_v17  ;;  %v576_v26 = vpop.f32.mrf.mxu0  ;;  %v1786_v30 = vsub.f32 %v2300_v0, %v2517_v24  ;;  %v1024_v45 = vadd.f32 %v1023_v11, %v3033_v8  ;;  %v2519_v62 = vld [vmem:[#allocation2 + $0x110] sm:$0xff] }
 0x1b9   :  { %2319 = vrcp.f32 %v1596_v20  ;;  %v1025_v29 = vpop.f32.mrf.mxu1 }
 0x1ba   :  { %v2302_v23 = vpop.eup %2301  ;;  %1976 = vst [vmem:[#allocation10 + $0xf0] sm:$0xff] %v1912_v12  ;;  %2321 = vpow2.f32 %v2067_v6  ;;  %v2068_v31 = vmul.f32 -1.442695, %v1257_v5  ;;  %v1026_v34 = vadd.f32 %v1025_v29, %v576_v26  ;;  %v580_v32 = vpop.f32.mrf.mxu0  ;;  %v1258_v8 = vadd.f32 %v2838_v14, %v1024_v45 }
 0x1bb   :  { %v2304_v27 = vpop.eup %2303  ;;  %v1849_v28 = vmul.f32 %v2302_v23, %v1785_v16  ;;  %v1029_v33 = vpop.f32.mrf.mxu1 }
 0x1bc   :  { %v2306_v19 = vpop.eup %2305  ;;  %v1597_v36 = vadd.f32 1.0, %v2304_v27  ;;  %2323 = vpow2.f32 %v2068_v31  ;;  %v1259_v37 = vadd.f32 %v2828_v47, %v1026_v34  ;;  %v582_v22 = vpop.f32.mrf.mxu0  ;;  %v1030_v11 = vadd.f32 %v1029_v33, %v580_v32 }
 0x1bd   :  { %v2308_v38 = vpop.eup %2307  ;;  %v1913_v39 = vadd.f32 %v2516_v15, %v1849_v28  ;;  %2325 = vtanh.f32 %v1250_v7  ;;  %v1031_v35 = vpop.f32.mrf.mxu1  ;;  %v1787_v55 = vsub.f32 %v2306_v19, %v2518_v54 }
 0x1be   :  { %v2310_v40 = vpop.eup %2309  ;;  %v1850_v42 = vmul.f32 %v2308_v38, %v1786_v30  ;;  %2327 = vrcp.f32 %v1597_v36  ;;  %v2069_v48 = vmul.f32 -1.442695, %v1259_v37  ;;  %v1032_v49 = vadd.f32 %v1031_v35, %v582_v22  ;;  %v3040_v53 = vpop.f32.mrf.mxu0 }
 0x1bf   :  { %1977 = vst [vmem:[#allocation10 + $0xf8] sm:$0xff] %v1913_v39  ;;  %v1598_v9 = vadd.f32 1.0, %v2310_v40  ;;  %2329 = vtanh.f32 %v1252_v18  ;;  %v3042_v46 = vpop.f32.mrf.mxu1  ;;  %v2312_v50 = vpop.eup %2311  ;;  %v2520_v18 = vld [vmem:[#allocation2 + $0x118] sm:$0xff]  ;;  %v1260_v32 = vadd.f32 %v2838_v14, %v1030_v11 }
 0x1c0   :  { %v1914_v51 = vadd.f32 %v2517_v24, %v1850_v42  ;;  %2331 = vpow2.f32 %v2069_v48  ;;  %v1261_v58 = vadd.f32 %v2828_v47, %v1032_v49  ;;  %v588_v56 = vpop.f32.mrf.mxu0  ;;  %v1788_v17 = vsub.f32 %v2312_v50, %v2519_v62  ;;  %v2521_v42 = vld [vmem:[#allocation2 + $0x120] sm:$0xff] }
 0x1c1   :  { %v2314_v52 = vpop.eup %2313  ;;  %2333 = vrcp.f32 %v1598_v9  ;;  %v1037_v57 = vpop.f32.mrf.mxu1  ;;  %v1036_v22 = vadd.f32 %v3042_v46, %v3040_v53  ;;  %v2522_v46 = vld [vmem:[#allocation2 + $0x128] sm:$0xff] }
 0x1c2   :  { %v2316_v61 = vpop.eup %2315  ;;  %1978 = vst [vmem:[#allocation10 + $0x100] sm:$0xff] %v1914_v51  ;;  %v1599_v59 = vadd.f32 1.0, %v2314_v52  ;;  %v1038_v2 = vadd.f32 %v1037_v57, %v588_v56  ;;  %2335 = vtanh.f32 %v1254_v41  ;;  %v2070_v63 = vmul.f32 -1.442695, %v1261_v58  ;;  %v592_v10 = vpop.f32.mrf.mxu0 }
 0x1c3   :  { %v1851_v44 = vmul.f32 %v2316_v61, %v1787_v55  ;;  %v1041_v13 = vpop.f32.mrf.mxu1  ;;  %v2318_v1 = vpop.eup %2317  ;;  %v1262_v61 = vadd.f32 %v2838_v14, %v1036_v22 }
 0x1c4   :  { %2337 = vrcp.f32 %v1599_v59  ;;  %v1263_v3 = vadd.f32 %v2828_v47, %v1038_v2  ;;  %v594_v20 = vpop.f32.mrf.mxu0  ;;  %v1789_v25 = vsub.f32 %v2318_v1, %v2520_v18 }
 0x1c5   :  { %v1915_v4 = vadd.f32 %v2518_v54, %v1851_v44  ;;  %2339 = vpow2.f32 %v2070_v63  ;;  %v1043_v21 = vpop.f32.mrf.mxu1  ;;  %v1042_v54 = vadd.f32 %v1041_v13, %v592_v10 }
 0x1c6   :  { %v2320_v6 = vpop.eup %2319  ;;  %2341 = vtanh.f32 %v1256_v60  ;;  %v2071_v12 = vmul.f32 -1.442695, %v1263_v3  ;;  %v1044_v15 = vadd.f32 %v1043_v21, %v594_v20  ;;  %v598_v16 = vpop.f32.mrf.mxu0 }
 0x1c7   :  { %v2322_v5 = vpop.eup %2321  ;;  %1979 = vst [vmem:[#allocation10 + $0x108] sm:$0xff] %v1915_v4  ;;  %v1852_v0 = vmul.f32 %v2320_v6, %v1788_v17  ;;  %v1047_v7 = vpop.f32.mrf.mxu1  ;;  %v1264_v4 = vadd.f32 %v2838_v14, %v1042_v54 }
 0x1c8   :  { %v1600_v26 = vadd.f32 1.0, %v2322_v5  ;;  %2343 = vpow2.f32 %v2071_v12  ;;  %v1265_v31 = vadd.f32 %v2828_v47, %v1044_v15  ;;  %v600_v34 = vpop.f32.mrf.mxu0 }
 0x1c9   :  { %v2324_v29 = vpop.eup %2323  ;;  %v1916_v23 = vadd.f32 %v2519_v62, %v1852_v0  ;;  %v1049_v27 = vpop.f32.mrf.mxu1  ;;  %v1048_v62 = vadd.f32 %v1047_v7, %v598_v16  ;;  %v2523_v0 = vld [vmem:[#allocation2 + $0x130] sm:$0xff]  ;;  %v2524_v16 = vld [vmem:[#allocation2 + $0x138] sm:$0xff] }
 0x1ca   :  { %v2326_v28 = vpop.eup %2325  ;;  %2345 = vrcp.f32 %v1600_v26  ;;  %v1601_v19 = vadd.f32 1.0, %v2324_v29  ;;  %v1050_v24 = vadd.f32 %v1049_v27, %v600_v34  ;;  %v2072_v33 = vmul.f32 -1.442695, %v1265_v31  ;;  %v3051_v36 = vpop.f32.mrf.mxu0 }
 0x1cb   :  { %v2328_v30 = vpop.eup %2327  ;;  %1980 = vst [vmem:[#allocation10 + $0x110] sm:$0xff] %v1916_v23  ;;  %2347 = vtanh.f32 %v1258_v8  ;;  %v3053_v37 = vpop.f32.mrf.mxu1  ;;  %v1790_v43 = vsub.f32 %v2326_v28, %v2521_v42  ;;  %v1266_v34 = vadd.f32 %v2838_v14, %v1048_v62 }
 0x1cc   :  { %v2330_v38 = vpop.eup %2329  ;;  %v1853_v39 = vmul.f32 %v2328_v30, %v1789_v25  ;;  %2349 = vrcp.f32 %v1601_v19  ;;  %v1267_v35 = vadd.f32 %v2828_v47, %v1050_v24  ;;  %v606_v48 = vpop.f32.mrf.mxu0  ;;  %v1054_v19 = vadd.f32 %v3053_v37, %v3051_v36 }
 0x1cd   :  { %v2332_v40 = vpop.eup %2331  ;;  %2351 = vpow2.f32 %v2072_v33  ;;  %v1055_v9 = vpop.f32.mrf.mxu1  ;;  %v1791_v57 = vsub.f32 %v2330_v38, %v2522_v46 }
 0x1ce   :  { %v2334_v41 = vpop.eup %2333  ;;  %v1917_v49 = vadd.f32 %v2520_v18, %v1853_v39  ;;  %v1602_v50 = vadd.f32 1.0, %v2332_v40  ;;  %v2073_v51 = vmul.f32 -1.442695, %v1267_v35  ;;  %2353 = vtanh.f32 %v1260_v32  ;;  %v3058_v58 = vpop.f32.mrf.mxu0 }
 0x1cf   :  { %v1854_v52 = vmul.f32 %v2334_v41, %v1790_v43  ;;  %v1056_v55 = vadd.f32 %v1055_v9, %v606_v48  ;;  %v3060_v56 = vpop.f32.mrf.mxu1  ;;  %v2336_v53 = vpop.eup %2335  ;;  %v1268_v37 = vadd.f32 %v2838_v14, %v1054_v19 }
 0x1d0   :  { %1981 = vst [vmem:[#allocation10 + $0x118] sm:$0xff] %v1917_v49  ;;  %2355 = vrcp.f32 %v1602_v50  ;;  %v612_v44 = vpop.f32.mrf.mxu0  ;;  %v1792_v8 = vsub.f32 %v2336_v53, %v2523_v0  ;;  %v2525_v49 = vld [vmem:[#allocation2 + $0x140] sm:$0xff] }
 0x1d1   :  { %v2338_v59 = vpop.eup %2337  ;;  %v1918_v60 = vadd.f32 %v2521_v42, %v1854_v52  ;;  %2357 = vpow2.f32 %v2073_v51  ;;  %v1269_v2 = vadd.f32 %v2828_v47, %v1056_v55  ;;  %v1061_v45 = vpop.f32.mrf.mxu1  ;;  %v1060_v51 = vadd.f32 %v3060_v56, %v3058_v58  ;;  %v2526_v58 = vld [vmem:[#allocation2 + $0x148] sm:$0xff] }
 0x1d2   :  { %v2340_v63 = vpop.eup %2339  ;;  %v1855_v10 = vmul.f32 %v2338_v59, %v1791_v57  ;;  %v1062_v13 = vadd.f32 %v1061_v45, %v612_v44  ;;  %v616_v20 = vpop.f32.mrf.mxu0  ;;  %2359 = vtanh.f32 %v1262_v61 }
 0x1d3   :  { %v2342_v3 = vpop.eup %2341  ;;  %1982 = vst [vmem:[#allocation10 + $0x120] sm:$0xff] %v1918_v60  ;;  %v1603_v1 = vadd.f32 1.0, %v2340_v63  ;;  %v2074_v17 = vmul.f32 -1.442695, %v1269_v2  ;;  %v1065_v21 = vpop.f32.mrf.mxu1 }
 0x1d4   :  { %v1919_v6 = vadd.f32 %v2522_v46, %v1855_v10  ;;  %v1271_v12 = vadd.f32 %v2828_v47, %v1062_v13  ;;  %v618_v11 = vpop.f32.mrf.mxu0  ;;  %v1793_v7 = vsub.f32 %v2342_v3, %v2524_v16  ;;  %v1066_v59 = vadd.f32 %v1065_v21, %v616_v20 }
 0x1d5   :  { %v2344_v5 = vpop.eup %2343  ;;  %2361 = vrcp.f32 %v1603_v1  ;;  %v1067_v15 = vpop.f32.mrf.mxu1  ;;  %v1270_v13 = vadd.f32 %v2838_v14, %v1060_v51 }
 0x1d6   :  { %1983 = vst [vmem:[#allocation10 + $0x128] sm:$0xff] %v1919_v6  ;;  %v1604_v26 = vadd.f32 1.0, %v2344_v5  ;;  %2363 = vpow2.f32 %v2074_v17  ;;  %v2075_v29 = vmul.f32 -1.442695, %v1271_v12  ;;  %v1068_v23 = vadd.f32 %v1067_v15, %v618_v11  ;;  %v622_v27 = vpop.f32.mrf.mxu0  ;;  %v2527_v11 = vld [vmem:[#allocation2 + $0x150] sm:$0xff] }
 0x1d7   :  { %v2346_v31 = vpop.eup %2345  ;;  %2365 = vtanh.f32 %v1264_v4  ;;  %v1071_v28 = vpop.f32.mrf.mxu1  ;;  %v1272_v6 = vadd.f32 %v2838_v14, %v1066_v59 }
 0x1d8   :  { %v2348_v18 = vpop.eup %2347  ;;  %v1856_v25 = vmul.f32 %v2346_v31, %v1792_v8  ;;  %2367 = vrcp.f32 %v1604_v26  ;;  %v1273_v24 = vadd.f32 %v2828_v47, %v1068_v23  ;;  %v624_v32 = vpop.f32.mrf.mxu0  ;;  %v1072_v12 = vadd.f32 %v1071_v28, %v622_v27 }
 0x1d9   :  { %v2350_v30 = vpop.eup %2349  ;;  %2369 = vpow2.f32 %v2075_v29  ;;  %v1073_v33 = vpop.f32.mrf.mxu1  ;;  %v1794_v36 = vsub.f32 %v2348_v18, %v2525_v49 }
 0x1da   :  { %v2352_v38 = vpop.eup %2351  ;;  %v1920_v39 = vadd.f32 %v2523_v0, %v1856_v25  ;;  %v1857_v22 = vmul.f32 %v2350_v30, %v1793_v7  ;;  %v2076_v35 = vmul.f32 -1.442695, %v1273_v24  ;;  %2371 = vtanh.f32 %v1266_v34  ;;  %v628_v43 = vpop.f32.mrf.mxu0 }
 0x1db   :  { %v1605_v40 = vadd.f32 1.0, %v2352_v38  ;;  %v1074_v42 = vadd.f32 %v1073_v33, %v624_v32  ;;  %v1077_v48 = vpop.f32.mrf.mxu1  ;;  %v2354_v9 = vpop.eup %2353  ;;  %v1274_v28 = vadd.f32 %v2838_v14, %v1072_v12 }
 0x1dc   :  { %1984 = vst [vmem:[#allocation10 + $0x130] sm:$0xff] %v1920_v39  ;;  %v1921_v41 = vadd.f32 %v2524_v16, %v1857_v22  ;;  %2373 = vpow2.f32 %v2076_v35  ;;  %v630_v54 = vpop.f32.mrf.mxu0  ;;  %v1795_v56 = vsub.f32 %v2354_v9, %v2526_v58  ;;  %v1078_v25 = vadd.f32 %v1077_v48, %v628_v43  ;;  %v2528_v22 = vld [vmem:[#allocation2 + $0x158] sm:$0xff] }
 0x1dd   :  { %v2356_v50 = vpop.eup %2355  ;;  %2375 = vrcp.f32 %v1605_v40  ;;  %v1275_v52 = vadd.f32 %v2828_v47, %v1074_v42  ;;  %v1079_v55 = vpop.f32.mrf.mxu1 }
 0x1de   :  { %v2358_v53 = vpop.eup %2357  ;;  %1985 = vst [vmem:[#allocation10 + $0x138] sm:$0xff] %v1921_v41  ;;  %v1858_v46 = vmul.f32 %v2356_v50, %v1794_v36  ;;  %v1080_v57 = vadd.f32 %v1079_v55, %v630_v54  ;;  %v3074_v2 = vpop.f32.mrf.mxu0  ;;  %2377 = vtanh.f32 %v1268_v37  ;;  %v1276_v41 = vadd.f32 %v2838_v14, %v1078_v25 }
 0x1df   :  { %v1606_v61 = vadd.f32 1.0, %v2358_v53  ;;  %v2077_v60 = vmul.f32 -1.442695, %v1275_v52  ;;  %v1083_v44 = vpop.f32.mrf.mxu1  ;;  %v2360_v10 = vpop.eup %2359 }
 0x1e0   :  { %v1922_v45 = vadd.f32 %v2525_v49, %v1858_v46  ;;  %v1277_v63 = vadd.f32 %v2828_v47, %v1080_v57  ;;  %v636_v3 = vpop.f32.mrf.mxu0  ;;  %v1796_v15 = vsub.f32 %v2360_v10, %v2527_v11  ;;  %v1084_v37 = vadd.f32 %v1083_v44, %v3074_v2  ;;  %v2529_v46 = vld [vmem:[#allocation2 + $0x160] sm:$0xff] }
 0x1e1   :  { %2379 = vrcp.f32 %v1606_v61  ;;  %v1085_v1 = vpop.f32.mrf.mxu1 }
 0x1e2   :  { %v2362_v4 = vpop.eup %2361  ;;  %1986 = vst [vmem:[#allocation10 + $0x140] sm:$0xff] %v1922_v45  ;;  %2381 = vpow2.f32 %v2077_v60  ;;  %v2078_v62 = vmul.f32 -1.442695, %v1277_v63  ;;  %v1086_v17 = vadd.f32 %v1085_v1, %v636_v3  ;;  %v640_v5 = vpop.f32.mrf.mxu0  ;;  %v1278_v2 = vadd.f32 %v2838_v14, %v1084_v37 }
 0x1e3   :  { %v2364_v20 = vpop.eup %2363  ;;  %v1859_v21 = vmul.f32 %v2362_v4, %v1795_v56  ;;  %v1089_v0 = vpop.f32.mrf.mxu1 }
 0x1e4   :  { %v2366_v8 = vpop.eup %2365  ;;  %v1607_v26 = vadd.f32 1.0, %v2364_v20  ;;  %2383 = vpow2.f32 %v2078_v62  ;;  %v1279_v29 = vadd.f32 %v2828_v47, %v1086_v17  ;;  %v642_v16 = vpop.f32.mrf.mxu0  ;;  %v1090_v44 = vadd.f32 %v1089_v0, %v640_v5 }
 0x1e5   :  { %v2368_v23 = vpop.eup %2367  ;;  %v1923_v31 = vadd.f32 %v2526_v58, %v1859_v21  ;;  %2385 = vtanh.f32 %v1270_v13  ;;  %v1091_v7 = vpop.f32.mrf.mxu1  ;;  %v1797_v35 = vsub.f32 %v2366_v8, %v2528_v22 }
 0x1e6   :  { %v2370_v34 = vpop.eup %2369  ;;  %v1860_v18 = vmul.f32 %v2368_v23, %v1796_v15  ;;  %2387 = vrcp.f32 %v1607_v26  ;;  %v2079_v19 = vmul.f32 -1.442695, %v1279_v29  ;;  %v1092_v24 = vadd.f32 %v1091_v7, %v642_v16  ;;  %v3081_v30 = vpop.f32.mrf.mxu0 }
 0x1e7   :  { %1987 = vst [vmem:[#allocation10 + $0x148] sm:$0xff] %v1923_v31  ;;  %v1608_v27 = vadd.f32 1.0, %v2370_v34  ;;  %2389 = vtanh.f32 %v1272_v6  ;;  %v3083_v32 = vpop.f32.mrf.mxu1  ;;  %v2372_v33 = vpop.eup %2371  ;;  %v2530_v6 = vld [vmem:[#allocation2 + $0x168] sm:$0xff]  ;;  %v1280_v5 = vadd.f32 %v2838_v14, %v1090_v44 }
 0x1e8   :  { %v1924_v38 = vadd.f32 %v2527_v11, %v1860_v18  ;;  %2391 = vpow2.f32 %v2079_v19  ;;  %v1281_v40 = vadd.f32 %v2828_v47, %v1092_v24  ;;  %v648_v42 = vpop.f32.mrf.mxu0  ;;  %v1798_v57 = vsub.f32 %v2372_v33, %v2529_v46  ;;  %v2531_v18 = vld [vmem:[#allocation2 + $0x170] sm:$0xff] }
 0x1e9   :  { %v2374_v39 = vpop.eup %2373  ;;  %2393 = vrcp.f32 %v1608_v27  ;;  %v1097_v43 = vpop.f32.mrf.mxu1  ;;  %v1096_v16 = vadd.f32 %v3083_v32, %v3081_v30  ;;  %v2532_v32 = vld [vmem:[#allocation2 + $0x178] sm:$0xff] }
 0x1ea   :  { %v2376_v48 = vpop.eup %2375  ;;  %1988 = vst [vmem:[#allocation10 + $0x150] sm:$0xff] %v1924_v38  ;;  %v1609_v9 = vadd.f32 1.0, %v2374_v39  ;;  %v1098_v49 = vadd.f32 %v1097_v43, %v648_v42  ;;  %2395 = vtanh.f32 %v1274_v28  ;;  %v2080_v50 = vmul.f32 -1.442695, %v1281_v40  ;;  %v652_v51 = vpop.f32.mrf.mxu0 }
 0x1eb   :  { %v1861_v36 = vmul.f32 %v2376_v48, %v1797_v35  ;;  %v1101_v52 = vpop.f32.mrf.mxu1  ;;  %v2378_v55 = vpop.eup %2377  ;;  %v1282_v48 = vadd.f32 %v2838_v14, %v1096_v16 }
 0x1ec   :  { %2397 = vrcp.f32 %v1609_v9  ;;  %v1283_v54 = vadd.f32 %v2828_v47, %v1098_v49  ;;  %v654_v61 = vpop.f32.mrf.mxu0  ;;  %v1799_v12 = vsub.f32 %v2378_v55, %v2530_v6 }
 0x1ed   :  { %v1925_v53 = vadd.f32 %v2528_v22, %v1861_v36  ;;  %2399 = vpow2.f32 %v2080_v50  ;;  %v1103_v59 = vpop.f32.mrf.mxu1  ;;  %v1102_v22 = vadd.f32 %v1101_v52, %v652_v51 }
 0x1ee   :  { %v2380_v60 = vpop.eup %2379  ;;  %2401 = vtanh.f32 %v1276_v41  ;;  %v2081_v45 = vmul.f32 -1.442695, %v1283_v54  ;;  %v1104_v58 = vadd.f32 %v1103_v59, %v654_v61  ;;  %v658_v56 = vpop.f32.mrf.mxu0 }
 0x1ef   :  { %v2382_v63 = vpop.eup %2381  ;;  %1989 = vst [vmem:[#allocation10 + $0x158] sm:$0xff] %v1925_v53  ;;  %v1862_v10 = vmul.f32 %v2380_v60, %v1798_v57  ;;  %v1107_v13 = vpop.f32.mrf.mxu1  ;;  %v1284_v53 = vadd.f32 %v2838_v14, %v1102_v22 }
 0x1f0   :  { %v1610_v3 = vadd.f32 1.0, %v2382_v63  ;;  %2403 = vpow2.f32 %v2081_v45  ;;  %v1285_v62 = vadd.f32 %v2828_v47, %v1104_v58  ;;  %v660_v17 = vpop.f32.mrf.mxu0 }
 0x1f1   :  { %v2384_v1 = vpop.eup %2383  ;;  %v1926_v4 = vadd.f32 %v2529_v46, %v1862_v10  ;;  %v1109_v20 = vpop.f32.mrf.mxu1  ;;  %v1108_v46 = vadd.f32 %v1107_v13, %v658_v56  ;;  %v2533_v10 = vld [vmem:[#allocation2 + $0x180] sm:$0xff]  ;;  %v2534_v56 = vld [vmem:[#allocation2 + $0x188] sm:$0xff] }
 0x1f2   :  { %v2386_v21 = vpop.eup %2385  ;;  %2405 = vrcp.f32 %v1610_v3  ;;  %v1611_v8 = vadd.f32 1.0, %v2384_v1  ;;  %v1110_v11 = vadd.f32 %v1109_v20, %v660_v17  ;;  %v2082_v0 = vmul.f32 -1.442695, %v1285_v62  ;;  %v3092_v26 = vpop.f32.mrf.mxu0 }
 0x1f3   :  { %v2388_v15 = vpop.eup %2387  ;;  %1990 = vst [vmem:[#allocation10 + $0x160] sm:$0xff] %v1926_v4  ;;  %2407 = vtanh.f32 %v1278_v2  ;;  %v3094_v29 = vpop.f32.mrf.mxu1  ;;  %v1800_v25 = vsub.f32 %v2386_v21, %v2531_v18  ;;  %v1286_v17 = vadd.f32 %v2838_v14, %v1108_v46 }
 0x1f4   :  { %v2390_v23 = vpop.eup %2389  ;;  %v1863_v31 = vmul.f32 %v2388_v15, %v1799_v12  ;;  %2409 = vrcp.f32 %v1611_v8  ;;  %v1287_v7 = vadd.f32 %v2828_v47, %v1110_v11  ;;  %v666_v19 = vpop.f32.mrf.mxu0  ;;  %v1114_v8 = vadd.f32 %v3094_v29, %v3092_v26  ;;  %v2535_v26 = vld [vmem:[#allocation2 + $0x190] sm:$0xff] }
 0x1f5   :  { %v2392_v34 = vpop.eup %2391  ;;  %2411 = vpow2.f32 %v2082_v0  ;;  %v1115_v27 = vpop.f32.mrf.mxu1  ;;  %v1801_v43 = vsub.f32 %v2390_v23, %v2532_v32 }
 0x1f6   :  { %v2394_v28 = vpop.eup %2393  ;;  %v1927_v24 = vadd.f32 %v2530_v6, %v1863_v31  ;;  %v1612_v33 = vadd.f32 1.0, %v2392_v34  ;;  %v2083_v38 = vmul.f32 -1.442695, %v1287_v7  ;;  %2413 = vtanh.f32 %v1280_v5  ;;  %v3099_v40 = vpop.f32.mrf.mxu0 }
 0x1f7   :  { %v1864_v39 = vmul.f32 %v2394_v28, %v1800_v25  ;;  %v1116_v35 = vadd.f32 %v1115_v27, %v666_v19  ;;  %v3101_v42 = vpop.f32.mrf.mxu1  ;;  %v2396_v30 = vpop.eup %2395 }
 0x1f8   :  { %1991 = vst [vmem:[#allocation10 + $0x168] sm:$0xff] %v1927_v24  ;;  %2415 = vrcp.f32 %v1612_v33  ;;  %v672_v36 = vpop.f32.mrf.mxu0  ;;  %v1802_v2 = vsub.f32 %v2396_v30, %v2533_v10  ;;  %v1288_v24 = vadd.f32 %v2838_v14, %v1114_v8 }
 0x1f9   :  { %v2398_v9 = vpop.eup %2397  ;;  %v1928_v41 = vadd.f32 %v2531_v18, %v1864_v39  ;;  %2417 = vpow2.f32 %v2083_v38  ;;  %v1289_v49 = vadd.f32 %v2828_v47, %v1116_v35  ;;  %v1121_v37 = vpop.f32.mrf.mxu1  ;;  %v1120_v38 = vadd.f32 %v3101_v42, %v3099_v40 }
 0x1fa   :  { %v2400_v50 = vpop.eup %2399  ;;  %v1865_v51 = vmul.f32 %v2398_v9, %v1801_v43  ;;  %v1122_v52 = vadd.f32 %v1121_v37, %v672_v36  ;;  %v676_v61 = vpop.f32.mrf.mxu0  ;;  %2419 = vtanh.f32 %v1282_v48 }
 0x1fb   :  { %v2402_v54 = vpop.eup %2401  ;;  %1992 = vst [vmem:[#allocation10 + $0x170] sm:$0xff] %v1928_v41  ;;  %v1613_v55 = vadd.f32 1.0, %v2400_v50  ;;  %v2084_v57 = vmul.f32 -1.442695, %v1289_v49  ;;  %v1125_v59 = vpop.f32.mrf.mxu1  ;;  %v1290_v42 = vadd.f32 %v2838_v14, %v1120_v38 }
 0x1fc   :  { %v1929_v60 = vadd.f32 %v2532_v32, %v1865_v51  ;;  %v1291_v45 = vadd.f32 %v2828_v47, %v1122_v52  ;;  %v678_v44 = vpop.f32.mrf.mxu0  ;;  %v1803_v13 = vsub.f32 %v2402_v54, %v2534_v56  ;;  %v1126_v9 = vadd.f32 %v1125_v59, %v676_v61  ;;  %v2536_v52 = vld [vmem:[#allocation2 + $0x198] sm:$0xff] }
 0x1fd   :  { %v2404_v63 = vpop.eup %2403  ;;  %2421 = vrcp.f32 %v1613_v55  ;;  %v1127_v58 = vpop.f32.mrf.mxu1 }
 0x1fe   :  { %1993 = vst [vmem:[#allocation10 + $0x178] sm:$0xff] %v1929_v60  ;;  %v1614_v3 = vadd.f32 1.0, %v2404_v63  ;;  %2423 = vpow2.f32 %v2084_v57  ;;  %v2085_v1 = vmul.f32 -1.442695, %v1291_v45  ;;  %v1128_v4 = vadd.f32 %v1127_v58, %v678_v44  ;;  %v3108_v20 = vpop.f32.mrf.mxu0 }
 0x1ff   :  { %v2406_v62 = vpop.eup %2405  ;;  %2425 = vtanh.f32 %v1284_v53  ;;  %v3110_v21 = vpop.f32.mrf.mxu1  ;;  %v1292_v60 = vadd.f32 %v2838_v14, %v1126_v9 }
 0x200   :  { %v2408_v6 = vpop.eup %2407  ;;  %v1866_v12 = vmul.f32 %v2406_v62, %v1802_v2  ;;  %2427 = vrcp.f32 %v1614_v3  ;;  %v1293_v11 = vadd.f32 %v2828_v47, %v1128_v4  ;;  %v684_v5 = vpop.f32.mrf.mxu0  ;;  %v2537_v2 = vld [vmem:[#allocation2 + $0x1a0] sm:$0xff] }
 0x201   :  { %v2410_v15 = vpop.eup %2409  ;;  %2429 = vpow2.f32 %v2085_v1  ;;  %v1133_v0 = vpop.f32.mrf.mxu1  ;;  %v1804_v29 = vsub.f32 %v2408_v6, %v2535_v26  ;;  %v1132_v6 = vadd.f32 %v3110_v21, %v3108_v20 }
 0x202   :  { %v2412_v23 = vpop.eup %2411  ;;  %v1930_v31 = vadd.f32 %v2533_v10, %v1866_v12  ;;  %v1867_v16 = vmul.f32 %v2410_v15, %v1803_v13  ;;  %v2086_v7 = vmul.f32 -1.442695, %v1293_v11  ;;  %2431 = vtanh.f32 %v1286_v17  ;;  %v3115_v25 = vpop.f32.mrf.mxu0 }
 0x203   :  { %v1615_v34 = vadd.f32 1.0, %v2412_v23  ;;  %v1134_v18 = vadd.f32 %v1133_v0, %v684_v5  ;;  %v1137_v19 = vpop.f32.mrf.mxu1  ;;  %v2414_v27 = vpop.eup %2413 }
 0x204   :  { %1994 = vst [vmem:[#allocation10 + $0x180] sm:$0xff] %v1930_v31  ;;  %v1931_v28 = vadd.f32 %v2534_v56, %v1867_v16  ;;  %2433 = vpow2.f32 %v2086_v7  ;;  %v690_v22 = vpop.f32.mrf.mxu0  ;;  %v1805_v40 = vsub.f32 %v2414_v27, %v2536_v52  ;;  %v1138_v11 = vadd.f32 %v1137_v19, %v3115_v25  ;;  %v2538_v7 = vld [vmem:[#allocation2 + $0x1a8] sm:$0xff] }
 0x205   :  { %v2416_v33 = vpop.eup %2415  ;;  %2435 = vrcp.f32 %v1615_v34  ;;  %v1295_v39 = vadd.f32 %v2828_v47, %v1134_v18  ;;  %v1139_v35 = vpop.f32.mrf.mxu1 }
 0x206   :  { %v2418_v30 = vpop.eup %2417  ;;  %1995 = vst [vmem:[#allocation10 + $0x188] sm:$0xff] %v1931_v28  ;;  %v1868_v32 = vmul.f32 %v2416_v33, %v1804_v29  ;;  %v1140_v43 = vadd.f32 %v1139_v35, %v690_v22  ;;  %v694_v49 = vpop.f32.mrf.mxu0  ;;  %2437 = vtanh.f32 %v1288_v24  ;;  %v1296_v29 = vadd.f32 %v2838_v14, %v1138_v11 }
 0x207   :  { %v1616_v48 = vadd.f32 1.0, %v2418_v30  ;;  %v2087_v41 = vmul.f32 -1.442695, %v1295_v39  ;;  %v1143_v36 = vpop.f32.mrf.mxu1  ;;  %v2420_v51 = vpop.eup %2419 }
 0x208   :  { %v1932_v37 = vadd.f32 %v2535_v26, %v1868_v32  ;;  %v1297_v50 = vadd.f32 %v2828_v47, %v1140_v43  ;;  %v696_v54 = vpop.f32.mrf.mxu0  ;;  %v1806_v44 = vsub.f32 %v2420_v51, %v2537_v2  ;;  %v1294_v26 = vadd.f32 %v2838_v14, %v1132_v6  ;;  %v2539_v32 = vld [vmem:[#allocation2 + $0x1b0] sm:$0xff] }
 0x209   :  { %2439 = vrcp.f32 %v1616_v48  ;;  %v1145_v55 = vpop.f32.mrf.mxu1  ;;  %v1144_v24 = vadd.f32 %v1143_v36, %v694_v49 }
 0x20a   :  { %v2422_v53 = vpop.eup %2421  ;;  %1996 = vst [vmem:[#allocation10 + $0x190] sm:$0xff] %v1932_v37  ;;  %2441 = vpow2.f32 %v2087_v41  ;;  %v2088_v46 = vmul.f32 -1.442695, %v1297_v50  ;;  %v1146_v57 = vadd.f32 %v1145_v55, %v696_v54  ;;  %v3124_v45 = vpop.f32.mrf.mxu0 }
 0x20b   :  { %v2424_v61 = vpop.eup %2423  ;;  %v1869_v59 = vmul.f32 %v2422_v53, %v1805_v40  ;;  %v3126_v63 = vpop.f32.mrf.mxu1  ;;  %v1298_v49 = vadd.f32 %v2838_v14, %v1144_v24 }
 0x20c   :  { %v2426_v10 = vpop.eup %2425  ;;  %v1617_v58 = vadd.f32 1.0, %v2424_v61  ;;  %2443 = vpow2.f32 %v2088_v46  ;;  %v1299_v3 = vadd.f32 %v2828_v47, %v1146_v57  ;;  %v702_v62 = vpop.f32.mrf.mxu0  ;;  %v1150_v54 = vadd.f32 %v3126_v63, %v3124_v45  ;;  %v2540_v46 = vld [vmem:[#allocation2 + $0x1b8] sm:$0xff] }
 0x20d   :  { %v2428_v1 = vpop.eup %2427  ;;  %v1933_v4 = vadd.f32 %v2536_v52, %v1869_v59  ;;  %2445 = vtanh.f32 %v1290_v42  ;;  %v1151_v56 = vpop.f32.mrf.mxu1  ;;  %v1807_v34 = vsub.f32 %v2426_v10, %v2538_v7 }
 0x20e   :  { %v2430_v13 = vpop.eup %2429  ;;  %v1870_v17 = vmul.f32 %v2428_v1, %v1806_v44  ;;  %2447 = vrcp.f32 %v1617_v58  ;;  %v2089_v12 = vmul.f32 -1.442695, %v1299_v3  ;;  %v1152_v15 = vadd.f32 %v1151_v56, %v702_v62  ;;  %v706_v5 = vpop.f32.mrf.mxu0  ;;  %v2541_v3 = vld [vmem:[#allocation2 + $0x1c0] sm:$0xff]  ;;  %v2542_v56 = vld [vmem:[#allocation2 + $0x1c8] sm:$0xff] }
 0x20f   :  { %1997 = vst [vmem:[#allocation10 + $0x198] sm:$0xff] %v1933_v4  ;;  %v1618_v8 = vadd.f32 1.0, %v2430_v13  ;;  %2449 = vtanh.f32 %v1292_v60  ;;  %v1155_v0 = vpop.f32.mrf.mxu1  ;;  %v2432_v23 = vpop.eup %2431  ;;  %v1300_v45 = vadd.f32 %v2838_v14, %v1150_v54 }
 0x210   :  { %v1934_v31 = vadd.f32 %v2537_v2, %v1870_v17  ;;  %2451 = vpow2.f32 %v2089_v12  ;;  %v1301_v18 = vadd.f32 %v2828_v47, %v1152_v15  ;;  %v708_v27 = vpop.f32.mrf.mxu0  ;;  %v1808_v43 = vsub.f32 %v2432_v23, %v2539_v32 }
 0x211   :  { %v2434_v16 = vpop.eup %2433  ;;  %2453 = vrcp.f32 %v1618_v8  ;;  %v1157_v20 = vpop.f32.mrf.mxu1  ;;  %v1156_v44 = vadd.f32 %v1155_v0, %v706_v5 }
 0x212   :  { %v2436_v21 = vpop.eup %2435  ;;  %1998 = vst [vmem:[#allocation10 + $0x1a0] sm:$0xff] %v1934_v31  ;;  %v1619_v28 = vadd.f32 1.0, %v2434_v16  ;;  %v1158_v25 = vadd.f32 %v1157_v20, %v708_v27  ;;  %v2090_v33 = vmul.f32 -1.442695, %v1301_v18  ;;  %v712_v38 = vpop.f32.mrf.mxu0 }
 0x213   :  { %v1871_v19 = vmul.f32 %v2436_v21, %v1807_v34  ;;  %v1161_v39 = vpop.f32.mrf.mxu1  ;;  %v2438_v35 = vpop.eup %2437  ;;  %v1302_v17 = vadd.f32 %v2838_v14, %v1156_v44  ;;  %v2543_v34 = vld [vmem:[#allocation2 + $0x1d0] sm:$0xff] }
 0x214   :  { %2455 = vrcp.f32 %v1619_v28  ;;  %v1303_v22 = vadd.f32 %v2828_v47, %v1158_v25  ;;  %v714_v48 = vpop.f32.mrf.mxu0  ;;  %v1809_v57 = vsub.f32 %v2438_v35, %v2540_v46  ;;  %v1162_v8 = vadd.f32 %v1161_v39, %v712_v38 }
 0x215   :  { %v1935_v30 = vadd.f32 %v2538_v7, %v1871_v19  ;;  %2457 = vpow2.f32 %v2090_v33  ;;  %v1163_v9 = vpop.f32.mrf.mxu1 }
 0x216   :  { %v2440_v41 = vpop.eup %2439  ;;  %2459 = vtanh.f32 %v1294_v26  ;;  %v2091_v37 = vmul.f32 -1.442695, %v1303_v22  ;;  %v1164_v36 = vadd.f32 %v1163_v9, %v714_v48  ;;  %v1304_v7 = vadd.f32 %v2838_v14, %v1162_v8  ;;  %v2544_v26 = vld [vmem:[#allocation2 + $0x1d8] sm:$0xff]  ;;  %v2545_v22 = vld [vmem:[#allocation2 + $0x1e0] sm:$0xff]  ;;  %v2546_v9 = vld [vmem:[#allocation2 + $0x1e8] sm:$0xff] }
 0x217   :  { %v2442_v50 = vpop.eup %2441  ;;  %1999 = vst [vmem:[#allocation10 + $0x1a8] sm:$0xff] %v1935_v30  ;;  %v1872_v51 = vmul.f32 %v2440_v41, %v1808_v43  ;;  %2461 = vtanh.f32 %v1296_v29 }
 0x218   :  { %v1620_v52 = vadd.f32 1.0, %v2442_v50  ;;  %2463 = vpow2.f32 %v2091_v37  ;;  %v1305_v55 = vadd.f32 %v2828_v47, %v1164_v36 }
 0x219   :  { %v2444_v40 = vpop.eup %2443  ;;  %v1936_v42 = vadd.f32 %v2539_v32, %v1872_v51  ;;  %v2547_v51 = vld [vmem:[#allocation2 + $0x1f0] sm:$0xff] }
 0x21a   :  { %v2446_v53 = vpop.eup %2445  ;;  %2465 = vrcp.f32 %v1620_v52  ;;  %v1621_v61 = vadd.f32 1.0, %v2444_v40  ;;  %v2092_v60 = vmul.f32 -1.442695, %v1305_v55  ;;  %v2548_v55 = vld [vmem:[#allocation2 + $0x1f8] sm:$0xff] }
 0x21b   :  { %v2448_v59 = vpop.eup %2447  ;;  %2000 = vst [vmem:[#allocation10 + $0x1b0] sm:$0xff] %v1936_v42  ;;  %2467 = vtanh.f32 %v1298_v49  ;;  %v1810_v1 = vsub.f32 %v2446_v53, %v2541_v3 }
 0x21c   :  { %v2450_v10 = vpop.eup %2449  ;;  %v1873_v2 = vmul.f32 %v2448_v59, %v1809_v57  ;;  %2469 = vrcp.f32 %v1621_v61 }
 0x21d   :  { %v2452_v58 = vpop.eup %2451  ;;  %2471 = vpow2.f32 %v2092_v60  ;;  %v1811_v13 = vsub.f32 %v2450_v10, %v2542_v56 }
 0x21e   :  { %v2454_v47 = vpop.eup %2453  ;;  %v1937_v63 = vadd.f32 %v2540_v46, %v1873_v2  ;;  %v1622_v4 = vadd.f32 1.0, %v2452_v58 }
 0x21f   :  { %v1874_v62 = vmul.f32 %v2454_v47, %v1810_v1 }
 0x220   :  { %2001 = vst [vmem:[#allocation10 + $0x1b8] sm:$0xff] %v1937_v63  ;;  %2473 = vrcp.f32 %v1622_v4 }
 0x221   :  { %v2456_v6 = vpop.eup %2455  ;;  %v1938_v12 = vadd.f32 %v2541_v3, %v1874_v62  ;;  %2475 = vtanh.f32 %v1300_v45 }
 0x222   :  { %v2458_v11 = vpop.eup %2457  ;;  %v1875_v15 = vmul.f32 %v2456_v6, %v1811_v13  ;;  %2477 = vtanh.f32 %v1302_v17 }
 0x223   :  { %v2460_v5 = vpop.eup %2459  ;;  %2002 = vst [vmem:[#allocation10 + $0x1c0] sm:$0xff] %v1938_v12  ;;  %v1623_v0 = vadd.f32 1.0, %v2458_v11 }
 0x224   :  { %v2462_v23 = vpop.eup %2461  ;;  %v1939_v31 = vadd.f32 %v2542_v56, %v1875_v15  ;;  %v1812_v18 = vsub.f32 %v2460_v5, %v2543_v34 }
 0x225   :  { %v2464_v16 = vpop.eup %2463  ;;  %2479 = vrcp.f32 %v1623_v0  ;;  %v1813_v25 = vsub.f32 %v2462_v23, %v2544_v26 }
 0x226   :  { %2003 = vst [vmem:[#allocation10 + $0x1c8] sm:$0xff] %v1939_v31  ;;  %v1624_v27 = vadd.f32 1.0, %v2464_v16 }
 0x227   :  { %v2466_v20 = vpop.eup %2465 }
 0x228   :  { %v2468_v21 = vpop.eup %2467  ;;  %v1876_v28 = vmul.f32 %v2466_v20, %v1812_v18  ;;  %2481 = vrcp.f32 %v1624_v27 }
 0x229   :  { %v2470_v19 = vpop.eup %2469  ;;  %2483 = vtanh.f32 %v1304_v7  ;;  %v1814_v14 = vsub.f32 %v2468_v21, %v2545_v22 }
 0x22a   :  { %v2472_v29 = vpop.eup %2471  ;;  %v1940_v24 = vadd.f32 %v2543_v34, %v1876_v28  ;;  %v1877_v33 = vmul.f32 %v2470_v19, %v1813_v25 }
 0x22b   :  { %v1625_v38 = vadd.f32 1.0, %v2472_v29 }
 0x22c   :  { %2004 = vst [vmem:[#allocation10 + $0x1d0] sm:$0xff] %v1940_v24  ;;  %v1941_v39 = vadd.f32 %v2544_v26, %v1877_v33 }
 0x22d   :  { %v2474_v35 = vpop.eup %2473  ;;  %2485 = vrcp.f32 %v1625_v38 }
 0x22e   :  { %v2476_v30 = vpop.eup %2475  ;;  %2005 = vst [vmem:[#allocation10 + $0x1d8] sm:$0xff] %v1941_v39  ;;  %v1878_v32 = vmul.f32 %v2474_v35, %v1814_v14 }
 0x22f   :  { %v2478_v48 = vpop.eup %2477  ;;  %v1815_v41 = vsub.f32 %v2476_v30, %v2546_v9 }
 0x230   :  { %v1942_v43 = vadd.f32 %v2545_v22, %v1878_v32  ;;  %v1816_v49 = vsub.f32 %v2478_v48, %v2547_v51 }
 0x232   :  { %v2480_v37 = vpop.eup %2479  ;;  %2006 = vst [vmem:[#allocation10 + $0x1e0] sm:$0xff] %v1942_v43 }
 0x233   :  { %v1879_v50 = vmul.f32 %v2480_v37, %v1815_v41 }
 0x235   :  { %v2482_v36 = vpop.eup %2481  ;;  %v1943_v52 = vadd.f32 %v2546_v9, %v1879_v50 }
 0x236   :  { %v2484_v40 = vpop.eup %2483  ;;  %v1880_v42 = vmul.f32 %v2482_v36, %v1816_v49 }
 0x237   :  { %2007 = vst [vmem:[#allocation10 + $0x1e8] sm:$0xff] %v1943_v52  ;;  %v1817_v53 = vsub.f32 %v2484_v40, %v2548_v55 }
 0x238   :  { %v1944_v54 = vadd.f32 %v2547_v51, %v1880_v42 }
 0x23a   :  { %v2486_v46 = vpop.eup %2485  ;;  %2008 = vst [vmem:[#allocation10 + $0x1f0] sm:$0xff] %v1944_v54 }
 0x23b   :  { %v1881_v57 = vmul.f32 %v2486_v46, %v1817_v53 }
 0x23d   :  { %v1945_v61 = vadd.f32 %v2548_v55, %v1881_v57 }
 0x23f   :  { %2009 = vst [vmem:[#allocation10 + $0x1f8] sm:$0xff] %v1945_v61 }
 0x240   :  { %2640 = shalt.err (!%p2637_p10)
}
 0x241   :  { %2021 = dma.vmem_to_hbm [thread:$0]  %s2016_s15, 8192, %s3154_s5, [#allocation4], %s2659_s23, %s2659_s23, %s2660_s24  }
 0x242   :  { %2655 = dma.done.wait [#allocation4], 8192  }
 0x243   :  { %2656 = vsyncadd [#allocation4], 4294959104 }
 0x244   :  { %2025 = vsyncpa [#allocation3], 1 }
 0x245   :  { %2026 = vsyncpa [#allocation6], 1 }
 0x246   :  { %2027 = vsyncpa [#allocation9], 1 }
 0x247   :  { %2028 = vsyncpa [#allocation4], 1 }

</bundles_post_ra>
